<compile_context>
chip_gen: v7x
topology: tpu7x:2x2x1
jax: 0.10.0
libtpu: 0.0.40
codegen_flags: <defaults>
</compile_context>

<pallas_src>
import math
import functools

import jax
import jax.numpy as jnp
from jax.experimental import pallas as pl
from jax.experimental.pallas import tpu as pltpu

EPS = 1e-6
NEG_INF = -1e9


# ------------------------------ in-kernel helpers ------------------------------ #

def _layernorm_f32(x, alpha, bias):
    # torch-style LN: alpha * (x - mean) / (std + eps) + bias, unbiased std (ddof=1).
    n = x.shape[-1]
    mean = jnp.mean(x, axis=-1, keepdims=True)
    var = jnp.sum((x - mean) ** 2, axis=-1, keepdims=True) * (1.0 / (n - 1))
    inv = pl.reciprocal(jnp.sqrt(var) + EPS, approx=True)   # EUP slot, not VALU
    return alpha * (x - mean) * inv + bias


def _mha_core(q, k, v, mask, n_heads, scale):
    # q: (Sq, D), k/v: (Sk, D), mask: (Sq, Sk); heads split via static slices.
    # Output is built with a single lane-dense concatenate -> one unmasked store.
    # TODO(synk): for long sequences convert to a KV-tiled online-softmax (flash) form;
    # here the full (Sq, Sk) score matrix per head fits easily in VMEM.
    Sq, D = q.shape
    dk = D // n_heads
    head_outs = []
    for h in range(n_heads):
        qh = q[:, h * dk:(h + 1) * dk]
        kh = k[:, h * dk:(h + 1) * dk]
        vh = v[:, h * dk:(h + 1) * dk]
        # q @ k^T without materializing a transpose (rhs-contracting dot_general).
        s = jax.lax.dot_general(qh, kh, (((1,), (1,)), ((), ())),
                                preferred_element_type=jnp.float32) * scale
        s = jnp.where(mask == 0.0, NEG_INF, s)
        s = s - jnp.max(s, axis=-1, keepdims=True)
        p = jnp.exp(s)
        p = p * pl.reciprocal(jnp.sum(p, axis=-1, keepdims=True), approx=True)
        head_outs.append(jnp.dot(p, vh, preferred_element_type=jnp.float32))
    return jnp.concatenate(head_outs, axis=-1)  # (Sq, D)


# --------------------------------- kernels ------------------------------------ #

def _self_attn_block_kernel(x_ref, m_ref, a_ref, b_ref, wqkv_ref, wo_ref, o_ref,
                            *, n_heads, scale):
    # One residual sub-block: x + Wo @ MHA(LN1(x) projected to QKV), per batch element.
    x = x_ref[...].astype(jnp.float32)                               # (Sq, D)
    D = x.shape[-1]
    xn = _layernorm_f32(x, a_ref[...], b_ref[...])
    qkv = jnp.dot(xn, wqkv_ref[...], preferred_element_type=jnp.float32)  # (Sq, 3D)
    q, k, v = qkv[:, :D], qkv[:, D:2 * D], qkv[:, 2 * D:]
    ctx = _mha_core(q, k, v, m_ref[...], n_heads, scale)
    out = jnp.dot(ctx, wo_ref[...], preferred_element_type=jnp.float32)
    o_ref[...] = (x + out).astype(o_ref.dtype)


def _cross_attn_block_kernel(x_ref, enc_ref, m_ref, a_ref, b_ref,
                             wq_ref, wkv_ref, wo_ref, o_ref, *, n_heads, scale):
    # x + Wo @ MHA(Q=LN2(x) Wq, K/V = enc Wkv), per batch element.  Encoder output
    # is NOT normalized (only the residual input x is, matching ResidualConnection).
    x = x_ref[...].astype(jnp.float32)                               # (Sq, D)
    enc = enc_ref[...].astype(jnp.float32)                           # (Sk, D)
    D = x.shape[-1]
    xn = _layernorm_f32(x, a_ref[...], b_ref[...])
    q = jnp.dot(xn, wq_ref[...], preferred_element_type=jnp.float32)       # (Sq, D)
    kv = jnp.dot(enc, wkv_ref[...], preferred_element_type=jnp.float32)    # (Sk, 2D)
    k, v = kv[:, :D], kv[:, D:]
    ctx = _mha_core(q, k, v, m_ref[...], n_heads, scale)
    out = jnp.dot(ctx, wo_ref[...], preferred_element_type=jnp.float32)
    o_ref[...] = (x + out).astype(o_ref.dtype)


def _ln_ffn_residual_kernel(x_ref, a_ref, b_ref, w1_ref, b1_ref, w2_ref, b2_ref, o_ref):
    # x + W2 @ ReLU(W1 @ LN3(x)), row-tiled over B*S.
    x = x_ref[...].astype(jnp.float32)
    xn = _layernorm_f32(x, a_ref[...], b_ref[...])
    h = jnp.dot(xn, w1_ref[...], preferred_element_type=jnp.float32) + b1_ref[...]
    h = jnp.maximum(h, 0.0)  # ReLU (dropout = identity at inference)
    o = jnp.dot(h, w2_ref[...], preferred_element_type=jnp.float32) + b2_ref[...]
    o_ref[...] = (x + o).astype(o_ref.dtype)


# ------------------------------ kernel wrappers -------------------------------- #

def _row_tile(m):
    # 256 rows keeps activation tiles small enough for double-buffering even on
    # v7x's 64 MiB VMEM while (resident) weight blocks stay pinned across the grid.
    return m if m <= 256 else 256


def _parallel(n):
    return pltpu.CompilerParams(dimension_semantics=("parallel",) * n)


def self_attention_block(x, tgt_mask, ln_a, ln_b, wqkv, wo, n_heads, scale):
    # x: (B, Sq, D), tgt_mask: (B, Sq, Sq) -> (B, Sq, D)
    B, Sq, D = x.shape
    kern = functools.partial(_self_attn_block_kernel, n_heads=n_heads, scale=scale)
    return pl.pallas_call(
        kern,
        out_shape=jax.ShapeDtypeStruct((B, Sq, D), x.dtype),
        grid=(B,),
        in_specs=[pl.BlockSpec((None, Sq, D), lambda b: (b, 0, 0)),
                  pl.BlockSpec((None, Sq, Sq), lambda b: (b, 0, 0)),
                  pl.BlockSpec((1, D), lambda b: (0, 0)),
                  pl.BlockSpec((1, D), lambda b: (0, 0)),
                  pl.BlockSpec((D, 3 * D), lambda b: (0, 0)),
                  pl.BlockSpec((D, D), lambda b: (0, 0))],
        out_specs=pl.BlockSpec((None, Sq, D), lambda b: (b, 0, 0)),
        compiler_params=_parallel(1),
    )(x, tgt_mask, ln_a.reshape(1, D), ln_b.reshape(1, D), wqkv, wo)


def cross_attention_block(x, enc, src_mask, ln_a, ln_b, wq, wkv, wo, n_heads, scale):
    # x: (B, Sq, D), enc: (B, Sk, D), src_mask: (B, Sq, Sk) -> (B, Sq, D)
    B, Sq, D = x.shape
    Sk = enc.shape[1]
    kern = functools.partial(_cross_attn_block_kernel, n_heads=n_heads, scale=scale)
    return pl.pallas_call(
        kern,
        out_shape=jax.ShapeDtypeStruct((B, Sq, D), x.dtype),
        grid=(B,),
        in_specs=[pl.BlockSpec((None, Sq, D), lambda b: (b, 0, 0)),
                  pl.BlockSpec((None, Sk, D), lambda b: (b, 0, 0)),
                  pl.BlockSpec((None, Sq, Sk), lambda b: (b, 0, 0)),
                  pl.BlockSpec((1, D), lambda b: (0, 0)),
                  pl.BlockSpec((1, D), lambda b: (0, 0)),
                  pl.BlockSpec((D, D), lambda b: (0, 0)),
                  pl.BlockSpec((D, 2 * D), lambda b: (0, 0)),
                  pl.BlockSpec((D, D), lambda b: (0, 0))],
        out_specs=pl.BlockSpec((None, Sq, D), lambda b: (b, 0, 0)),
        compiler_params=_parallel(1),
    )(x, enc, src_mask, ln_a.reshape(1, D), ln_b.reshape(1, D), wq, wkv, wo)


def ln_ffn_residual(x2d, ln_a, ln_b, w1, b1, w2, b2):
    M, D = x2d.shape
    F = w1.shape[1]
    tm = _row_tile(M)
    return pl.pallas_call(
        _ln_ffn_residual_kernel,
        out_shape=jax.ShapeDtypeStruct((M, D), x2d.dtype),
        grid=(pl.cdiv(M, tm),),
        in_specs=[pl.BlockSpec((tm, D), lambda i: (i, 0)),
                  pl.BlockSpec((1, D), lambda i: (0, 0)),
                  pl.BlockSpec((1, D), lambda i: (0, 0)),
                  pl.BlockSpec((D, F), lambda i: (0, 0)),
                  pl.BlockSpec((1, F), lambda i: (0, 0)),
                  pl.BlockSpec((F, D), lambda i: (0, 0)),
                  pl.BlockSpec((1, D), lambda i: (0, 0))],
        out_specs=pl.BlockSpec((tm, D), lambda i: (i, 0)),
        compiler_params=_parallel(1),
    )(x2d, ln_a.reshape(1, D), ln_b.reshape(1, D),
      w1, b1.reshape(1, F), w2, b2.reshape(1, D))


# ------------------------------- module forward -------------------------------- #

def decoder_block(x, encoder_output, src_mask, tgt_mask, params, n_heads):
    B, S, D = x.shape
    scale = 1.0 / math.sqrt(D // n_heads)

    # residual 1: x + SelfAttn(LN1(x))      -- single fused kernel
    sa = params["self_attn"]
    x = self_attention_block(x, tgt_mask, params["ln1_a"], params["ln1_b"],
                             sa["wqkv"], sa["wo"], n_heads, scale)

    # residual 2: x + CrossAttn(LN2(x), enc, enc)   -- single fused kernel
    ca = params["cross_attn"]
    x = cross_attention_block(x, encoder_output, src_mask,
                              params["ln2_a"], params["ln2_b"],
                              ca["wq"], ca["wkv"], ca["wo"], n_heads, scale)

    # residual 3: x + FFN(LN3(x))           -- single fused kernel, row-tiled
    x2d = ln_ffn_residual(x.reshape(B * S, D), params["ln3_a"], params["ln3_b"],
                          params["ff_w1"], params["ff_b1"],
                          params["ff_w2"], params["ff_b2"])
    return x2d.reshape(B, S, D)


# ------------------------------------ main -------------------------------------- #

def _init_params(key, d_model, d_ff):
    ks = jax.random.split(key, 12)
    sd = 0.02

    def w(k, shape):
        return sd * jax.random.normal(k, shape, jnp.float32)

    # Reference MultiHeadAttentionBlock uses bias=False projections.
    self_attn = {
        "wqkv": jnp.concatenate([w(ks[0], (d_model, d_model)),
                                 w(ks[1], (d_model, d_model)),
                                 w(ks[2], (d_model, d_model))], axis=1),
        "wo": w(ks[3], (d_model, d_model)),
    }
    cross_attn = {
        "wq": w(ks[4], (d_model, d_model)),
        "wkv": jnp.concatenate([w(ks[5], (d_model, d_model)),
                                w(ks[6], (d_model, d_model))], axis=1),
        "wo": w(ks[7], (d_model, d_model)),
    }
    return {
        "self_attn": self_attn,
        "cross_attn": cross_attn,
        "ff_w1": w(ks[8], (d_model, d_ff)),
        "ff_b1": w(ks[9], (d_ff,)),
        "ff_w2": w(ks[10], (d_ff, d_model)),
        "ff_b2": w(ks[11], (d_model,)),
        "ln1_a": jnp.ones((d_model,), jnp.float32),
        "ln1_b": jnp.zeros((d_model,), jnp.float32),
        "ln2_a": jnp.ones((d_model,), jnp.float32),
        "ln2_b": jnp.zeros((d_model,), jnp.float32),
        "ln3_a": jnp.ones((d_model,), jnp.float32),
        "ln3_b": jnp.zeros((d_model,), jnp.float32),
    }


if __name__ == "__main__":
    B, S_TGT, S_SRC, D, H, D_FF = 2, 8, 8, 32, 4, 64

    key = jax.random.PRNGKey(0)
    k_x, k_enc, k_p = jax.random.split(key, 3)

    x = jax.random.normal(k_x, (B, S_TGT, D), jnp.float32)
    encoder_output = jax.random.normal(k_enc, (B, S_SRC, D), jnp.float32)

    # tgt_mask: causal; src_mask: all-visible.  0 => masked (-1e9), nonzero => keep.
    causal = jnp.tril(jnp.ones((S_TGT, S_TGT), jnp.float32))
    tgt_mask = jnp.broadcast_to(causal, (B, S_TGT, S_TGT))
    src_mask = jnp.ones((B, S_TGT, S_SRC), jnp.float32)

    params = _init_params(k_p, D, D_FF)

    fwd = jax.jit(functools.partial(decoder_block, n_heads=H))
    out = fwd(x, encoder_output, src_mask, tgt_mask, params)
    out = jax.block_until_ready(out)
    assert out.shape == (B, S_TGT, D) and out.dtype == jnp.float32
    assert bool(jnp.all(jnp.isfinite(out)))
    print("KERNEL_OK")
</pallas_src>

<mosaic_0001>
module attributes {stable_mosaic.version = 11 : i64} {
  func.func @_ln_ffn_residual_kernel(%arg0: i32, %arg1: memref<16x32xf32, #tpu.memory_space<vmem>>, %arg2: memref<1x32xf32, #tpu.memory_space<vmem>>, %arg3: memref<1x32xf32, #tpu.memory_space<vmem>>, %arg4: memref<32x64xf32, #tpu.memory_space<vmem>>, %arg5: memref<1x64xf32, #tpu.memory_space<vmem>>, %arg6: memref<64x32xf32, #tpu.memory_space<vmem>>, %arg7: memref<1x32xf32, #tpu.memory_space<vmem>>, %arg8: memref<16x32xf32, #tpu.memory_space<vmem>>) attributes {dimension_semantics = [#tpu.dimension_semantics<parallel>], iteration_bounds = array<i64: 1>, scalar_prefetch = 0 : i64, scratch_operands = 0 : i64, tpu.core_type = #tpu.core_type<tc>, window_params = [{transform_indices = @transform_0, window_bounds = array<i64: 16, 32>}, {pipeline_mode = #tpu.pipeline_mode<synchronous>, transform_indices = @transform_1, window_bounds = array<i64: 1, 32>}, {pipeline_mode = #tpu.pipeline_mode<synchronous>, transform_indices = @transform_2, window_bounds = array<i64: 1, 32>}, {pipeline_mode = #tpu.pipeline_mode<synchronous>, transform_indices = @transform_3, window_bounds = array<i64: 32, 64>}, {pipeline_mode = #tpu.pipeline_mode<synchronous>, transform_indices = @transform_4, window_bounds = array<i64: 1, 64>}, {pipeline_mode = #tpu.pipeline_mode<synchronous>, transform_indices = @transform_5, window_bounds = array<i64: 64, 32>}, {pipeline_mode = #tpu.pipeline_mode<synchronous>, transform_indices = @transform_6, window_bounds = array<i64: 1, 32>}, {transform_indices = @transform_7, window_bounds = array<i64: 16, 32>}]} {
    %c0 = arith.constant 0 : index
    %c0_0 = arith.constant 0 : index
    %0 = vector.load %arg1[%c0, %c0_0] : memref<16x32xf32, #tpu.memory_space<vmem>>, vector<16x32xf32>
    %c0_1 = arith.constant 0 : index
    %c0_2 = arith.constant 0 : index
    %1 = vector.load %arg2[%c0_1, %c0_2] : memref<1x32xf32, #tpu.memory_space<vmem>>, vector<1x32xf32>
    %c0_3 = arith.constant 0 : index
    %c0_4 = arith.constant 0 : index
    %2 = vector.load %arg3[%c0_3, %c0_4] : memref<1x32xf32, #tpu.memory_space<vmem>>, vector<1x32xf32>
    %cst = arith.constant dense<0.000000e+00> : vector<16xf32>
    %3 = vector.multi_reduction <add>, %0, %cst [1] : vector<16x32xf32> to vector<16xf32>
    %4 = vector.shape_cast %3 : vector<16xf32> to vector<16x1xf32>
    %cst_5 = arith.constant 3.200000e+01 : f32
    %5 = vector.broadcast %cst_5 : f32 to vector<16x1xf32>
    %6 = arith.divf %4, %5 : vector<16x1xf32>
    %7 = vector.broadcast %6 : vector<16x1xf32> to vector<16x32xf32>
    %8 = arith.subf %0, %7 : vector<16x32xf32>
    %9 = arith.mulf %8, %8 : vector<16x32xf32>
    %cst_6 = arith.constant dense<0.000000e+00> : vector<16xf32>
    %10 = vector.multi_reduction <add>, %9, %cst_6 [1] : vector<16x32xf32> to vector<16xf32>
    %11 = vector.shape_cast %10 : vector<16xf32> to vector<16x1xf32>
    %cst_7 = arith.constant 0.0322580636 : f32
    %12 = vector.broadcast %cst_7 : f32 to vector<16x1xf32>
    %13 = arith.mulf %11, %12 : vector<16x1xf32>
    %14 = math.sqrt %13 : vector<16x1xf32>
    %cst_8 = arith.constant 9.99999997E-7 : f32
    %15 = vector.broadcast %cst_8 : f32 to vector<16x1xf32>
    %16 = arith.addf %14, %15 : vector<16x1xf32>
    %17 = tpu.reciprocal %16 {approx = true} : vector<16x1xf32> -> vector<16x1xf32>
    %18 = vector.broadcast %6 : vector<16x1xf32> to vector<16x32xf32>
    %19 = arith.subf %0, %18 : vector<16x32xf32>
    %20 = vector.broadcast %1 : vector<1x32xf32> to vector<16x32xf32>
    %21 = arith.mulf %20, %19 : vector<16x32xf32>
    %22 = vector.broadcast %17 : vector<16x1xf32> to vector<16x32xf32>
    %23 = arith.mulf %21, %22 : vector<16x32xf32>
    %24 = vector.broadcast %2 : vector<1x32xf32> to vector<16x32xf32>
    %25 = arith.addf %23, %24 : vector<16x32xf32>
    %c0_9 = arith.constant 0 : index
    %c0_10 = arith.constant 0 : index
    %26 = vector.load %arg4[%c0_9, %c0_10] : memref<32x64xf32, #tpu.memory_space<vmem>>, vector<32x64xf32>
    %cst_11 = arith.constant dense<0.000000e+00> : vector<16x64xf32>
    %27 = tpu.matmul %25, %26, %cst_11 {dimension_numbers = #tpu.dot_dimension_numbers<[1], [0], [0], [1], [0, 0, 1, 1], [], []>} : vector<16x32xf32>, vector<32x64xf32>, vector<16x64xf32> -> vector<16x64xf32>
    %c0_12 = arith.constant 0 : index
    %c0_13 = arith.constant 0 : index
    %28 = vector.load %arg5[%c0_12, %c0_13] : memref<1x64xf32, #tpu.memory_space<vmem>>, vector<1x64xf32>
    %29 = vector.broadcast %28 : vector<1x64xf32> to vector<16x64xf32>
    %30 = arith.addf %27, %29 : vector<16x64xf32>
    %cst_14 = arith.constant 0.000000e+00 : f32
    %31 = vector.broadcast %cst_14 : f32 to vector<16x64xf32>
    %32 = arith.maximumf %30, %31 : vector<16x64xf32>
    %c0_15 = arith.constant 0 : index
    %c0_16 = arith.constant 0 : index
    %33 = vector.load %arg6[%c0_15, %c0_16] : memref<64x32xf32, #tpu.memory_space<vmem>>, vector<64x32xf32>
    %cst_17 = arith.constant dense<0.000000e+00> : vector<16x32xf32>
    %34 = tpu.matmul %32, %33, %cst_17 {dimension_numbers = #tpu.dot_dimension_numbers<[1], [0], [0], [1], [0, 0, 1, 1], [], []>} : vector<16x64xf32>, vector<64x32xf32>, vector<16x32xf32> -> vector<16x32xf32>
    %c0_18 = arith.constant 0 : index
    %c0_19 = arith.constant 0 : index
    %35 = vector.load %arg7[%c0_18, %c0_19] : memref<1x32xf32, #tpu.memory_space<vmem>>, vector<1x32xf32>
    %36 = vector.broadcast %35 : vector<1x32xf32> to vector<16x32xf32>
    %37 = arith.addf %34, %36 : vector<16x32xf32>
    %38 = arith.addf %0, %37 : vector<16x32xf32>
    %c0_20 = arith.constant 0 : index
    %c0_21 = arith.constant 0 : index
    %39 = vector.load %arg8[%c0_20, %c0_21] : memref<16x32xf32, #tpu.memory_space<vmem>>, vector<16x32xf32>
    tpu.vector_store %arg8[%c0_20, %c0_21], %38 {strides = array<i32>} : memref<16x32xf32, #tpu.memory_space<vmem>>, vector<16x32xf32>,
    return
  }
  func.func @transform_0(%arg0: i32) -> (i32, i32) {
    %c0_i32 = arith.constant 0 : i32
    %c0_i32_0 = arith.constant 0 : i32
    return %arg0, %c0_i32 : i32, i32
  }
  func.func @transform_1(%arg0: i32) -> (i32, i32) {
    %c0_i32 = arith.constant 0 : i32
    %c0_i32_0 = arith.constant 0 : i32
    %c0_i32_1 = arith.constant 0 : i32
    return %c0_i32, %c0_i32_0 : i32, i32
  }
  func.func @transform_2(%arg0: i32) -> (i32, i32) {
    %c0_i32 = arith.constant 0 : i32
    %c0_i32_0 = arith.constant 0 : i32
    %c0_i32_1 = arith.constant 0 : i32
    return %c0_i32, %c0_i32_0 : i32, i32
  }
  func.func @transform_3(%arg0: i32) -> (i32, i32) {
    %c0_i32 = arith.constant 0 : i32
    %c0_i32_0 = arith.constant 0 : i32
    %c0_i32_1 = arith.constant 0 : i32
    return %c0_i32, %c0_i32_0 : i32, i32
  }
  func.func @transform_4(%arg0: i32) -> (i32, i32) {
    %c0_i32 = arith.constant 0 : i32
    %c0_i32_0 = arith.constant 0 : i32
    %c0_i32_1 = arith.constant 0 : i32
    return %c0_i32, %c0_i32_0 : i32, i32
  }
  func.func @transform_5(%arg0: i32) -> (i32, i32) {
    %c0_i32 = arith.constant 0 : i32
    %c0_i32_0 = arith.constant 0 : i32
    %c0_i32_1 = arith.constant 0 : i32
    return %c0_i32, %c0_i32_0 : i32, i32
  }
  func.func @transform_6(%arg0: i32) -> (i32, i32) {
    %c0_i32 = arith.constant 0 : i32
    %c0_i32_0 = arith.constant 0 : i32
    %c0_i32_1 = arith.constant 0 : i32
    return %c0_i32, %c0_i32_0 : i32, i32
  }
  func.func @transform_7(%arg0: i32) -> (i32, i32) {
    %c0_i32 = arith.constant 0 : i32
    %c0_i32_0 = arith.constant 0 : i32
    return %arg0, %c0_i32 : i32, i32
  }
}

module attributes {stable_mosaic.version = 11 : i64} {
  func.func @_cross_attn_block_kernel(%arg0: i32, %arg1: memref<1x8x32xf32, #tpu.memory_space<vmem>>, %arg2: memref<1x8x32xf32, #tpu.memory_space<vmem>>, %arg3: memref<1x8x8xf32, #tpu.memory_space<vmem>>, %arg4: memref<1x32xf32, #tpu.memory_space<vmem>>, %arg5: memref<1x32xf32, #tpu.memory_space<vmem>>, %arg6: memref<32x32xf32, #tpu.memory_space<vmem>>, %arg7: memref<32x64xf32, #tpu.memory_space<vmem>>, %arg8: memref<32x32xf32, #tpu.memory_space<vmem>>, %arg9: memref<1x8x32xf32, #tpu.memory_space<vmem>>) attributes {dimension_semantics = [#tpu.dimension_semantics<parallel>], iteration_bounds = array<i64: 2>, scalar_prefetch = 0 : i64, scratch_operands = 0 : i64, tpu.core_type = #tpu.core_type<tc>, window_params = [{transform_indices = @transform_0, window_bounds = array<i64: 1, 8, 32>}, {transform_indices = @transform_1, window_bounds = array<i64: 1, 8, 32>}, {transform_indices = @transform_2, window_bounds = array<i64: 1, 8, 8>}, {pipeline_mode = #tpu.pipeline_mode<synchronous>, transform_indices = @transform_3, window_bounds = array<i64: 1, 32>}, {pipeline_mode = #tpu.pipeline_mode<synchronous>, transform_indices = @transform_4, window_bounds = array<i64: 1, 32>}, {pipeline_mode = #tpu.pipeline_mode<synchronous>, transform_indices = @transform_5, window_bounds = array<i64: 32, 32>}, {pipeline_mode = #tpu.pipeline_mode<synchronous>, transform_indices = @transform_6, window_bounds = array<i64: 32, 64>}, {pipeline_mode = #tpu.pipeline_mode<synchronous>, transform_indices = @transform_7, window_bounds = array<i64: 32, 32>}, {transform_indices = @transform_8, window_bounds = array<i64: 1, 8, 32>}]} {
    %c0 = arith.constant 0 : index
    %c0_0 = arith.constant 0 : index
    %c0_1 = arith.constant 0 : index
    %0 = vector.load %arg1[%c0, %c0_0, %c0_1] : memref<1x8x32xf32, #tpu.memory_space<vmem>>, vector<1x8x32xf32>
    %1 = vector.shape_cast %0 : vector<1x8x32xf32> to vector<8x32xf32>
    %c0_2 = arith.constant 0 : index
    %c0_3 = arith.constant 0 : index
    %c0_4 = arith.constant 0 : index
    %2 = vector.load %arg2[%c0_2, %c0_3, %c0_4] : memref<1x8x32xf32, #tpu.memory_space<vmem>>, vector<1x8x32xf32>
    %3 = vector.shape_cast %2 : vector<1x8x32xf32> to vector<8x32xf32>
    %c0_5 = arith.constant 0 : index
    %c0_6 = arith.constant 0 : index
    %4 = vector.load %arg4[%c0_5, %c0_6] : memref<1x32xf32, #tpu.memory_space<vmem>>, vector<1x32xf32>
    %c0_7 = arith.constant 0 : index
    %c0_8 = arith.constant 0 : index
    %5 = vector.load %arg5[%c0_7, %c0_8] : memref<1x32xf32, #tpu.memory_space<vmem>>, vector<1x32xf32>
    %cst = arith.constant dense<0.000000e+00> : vector<8xf32>
    %6 = vector.multi_reduction <add>, %1, %cst [1] : vector<8x32xf32> to vector<8xf32>
    %7 = vector.shape_cast %6 : vector<8xf32> to vector<8x1xf32>
    %cst_9 = arith.constant 3.200000e+01 : f32
    %8 = vector.broadcast %cst_9 : f32 to vector<8x1xf32>
    %9 = arith.divf %7, %8 : vector<8x1xf32>
    %10 = vector.broadcast %9 : vector<8x1xf32> to vector<8x32xf32>
    %11 = arith.subf %1, %10 : vector<8x32xf32>
    %12 = arith.mulf %11, %11 : vector<8x32xf32>
    %cst_10 = arith.constant dense<0.000000e+00> : vector<8xf32>
    %13 = vector.multi_reduction <add>, %12, %cst_10 [1] : vector<8x32xf32> to vector<8xf32>
    %14 = vector.shape_cast %13 : vector<8xf32> to vector<8x1xf32>
    %cst_11 = arith.constant 0.0322580636 : f32
    %15 = vector.broadcast %cst_11 : f32 to vector<8x1xf32>
    %16 = arith.mulf %14, %15 : vector<8x1xf32>
    %17 = math.sqrt %16 : vector<8x1xf32>
    %cst_12 = arith.constant 9.99999997E-7 : f32
    %18 = vector.broadcast %cst_12 : f32 to vector<8x1xf32>
    %19 = arith.addf %17, %18 : vector<8x1xf32>
    %20 = tpu.reciprocal %19 {approx = true} : vector<8x1xf32> -> vector<8x1xf32>
    %21 = vector.broadcast %9 : vector<8x1xf32> to vector<8x32xf32>
    %22 = arith.subf %1, %21 : vector<8x32xf32>
    %23 = vector.broadcast %4 : vector<1x32xf32> to vector<8x32xf32>
    %24 = arith.mulf %23, %22 : vector<8x32xf32>
    %25 = vector.broadcast %20 : vector<8x1xf32> to vector<8x32xf32>
    %26 = arith.mulf %24, %25 : vector<8x32xf32>
    %27 = vector.broadcast %5 : vector<1x32xf32> to vector<8x32xf32>
    %28 = arith.addf %26, %27 : vector<8x32xf32>
    %c0_13 = arith.constant 0 : index
    %c0_14 = arith.constant 0 : index
    %29 = vector.load %arg6[%c0_13, %c0_14] : memref<32x32xf32, #tpu.memory_space<vmem>>, vector<32x32xf32>
    %cst_15 = arith.constant dense<0.000000e+00> : vector<8x32xf32>
    %30 = tpu.matmul %28, %29, %cst_15 {dimension_numbers = #tpu.dot_dimension_numbers<[1], [0], [0], [1], [0, 0, 1, 1], [], []>} : vector<8x32xf32>, vector<32x32xf32>, vector<8x32xf32> -> vector<8x32xf32>
    %c0_16 = arith.constant 0 : index
    %c0_17 = arith.constant 0 : index
    %31 = vector.load %arg7[%c0_16, %c0_17] : memref<32x64xf32, #tpu.memory_space<vmem>>, vector<32x64xf32>
    %cst_18 = arith.constant dense<0.000000e+00> : vector<8x64xf32>
    %32 = tpu.matmul %3, %31, %cst_18 {dimension_numbers = #tpu.dot_dimension_numbers<[1], [0], [0], [1], [0, 0, 1, 1], [], []>} : vector<8x32xf32>, vector<32x64xf32>, vector<8x64xf32> -> vector<8x64xf32>
    %33 = vector.extract_strided_slice %32 {offsets = [0, 0], sizes = [8, 32], strides = [1, 1]} : vector<8x64xf32> to vector<8x32xf32>
    %34 = vector.extract_strided_slice %32 {offsets = [0, 32], sizes = [8, 32], strides = [1, 1]} : vector<8x64xf32> to vector<8x32xf32>
    %c0_19 = arith.constant 0 : index
    %c0_20 = arith.constant 0 : index
    %c0_21 = arith.constant 0 : index
    %35 = vector.load %arg3[%c0_19, %c0_20, %c0_21] : memref<1x8x8xf32, #tpu.memory_space<vmem>>, vector<1x8x8xf32>
    %36 = vector.shape_cast %35 : vector<1x8x8xf32> to vector<8x8xf32>
    %37 = vector.extract_strided_slice %30 {offsets = [0, 0], sizes = [8, 8], strides = [1, 1]} : vector<8x32xf32> to vector<8x8xf32>
    %38 = vector.extract_strided_slice %33 {offsets = [0, 0], sizes = [8, 8], strides = [1, 1]} : vector<8x32xf32> to vector<8x8xf32>
    %39 = vector.extract_strided_slice %34 {offsets = [0, 0], sizes = [8, 8], strides = [1, 1]} : vector<8x32xf32> to vector<8x8xf32>
    %cst_22 = arith.constant dense<0.000000e+00> : vector<8x8xf32>
    %40 = tpu.matmul %37, %38, %cst_22 {dimension_numbers = #tpu.dot_dimension_numbers<[1], [1], [0], [0], [0, 0, 1, 0], [], []>} : vector<8x8xf32>, vector<8x8xf32>, vector<8x8xf32> -> vector<8x8xf32>
    %cst_23 = arith.constant 0.353553385 : f32
    %41 = vector.broadcast %cst_23 : f32 to vector<8x8xf32>
    %42 = arith.mulf %40, %41 : vector<8x8xf32>
    %cst_24 = arith.constant 0.000000e+00 : f32
    %43 = vector.broadcast %cst_24 : f32 to vector<8x8xf32>
    %44 = arith.cmpf oeq, %36, %43 : vector<8x8xf32>
    %cst_25 = arith.constant -1.000000e+09 : f32
    %45 = vector.broadcast %cst_25 : f32 to vector<8x8xf32>
    %46 = arith.select %44, %45, %42 : vector<8x8xi1>, vector<8x8xf32>
    %cst_26 = arith.constant dense<0xFF800000> : vector<8xf32>
    %47 = vector.multi_reduction <maximumf>, %46, %cst_26 [1] : vector<8x8xf32> to vector<8xf32>
    %48 = vector.shape_cast %47 : vector<8xf32> to vector<8x1xf32>
    %49 = vector.broadcast %48 : vector<8x1xf32> to vector<8x8xf32>
    %50 = arith.subf %46, %49 : vector<8x8xf32>
    %51 = math.exp %50 : vector<8x8xf32>
    %cst_27 = arith.constant dense<0.000000e+00> : vector<8xf32>
    %52 = vector.multi_reduction <add>, %51, %cst_27 [1] : vector<8x8xf32> to vector<8xf32>
    %53 = vector.shape_cast %52 : vector<8xf32> to vector<8x1xf32>
    %54 = tpu.reciprocal %53 {approx = true} : vector<8x1xf32> -> vector<8x1xf32>
    %55 = vector.broadcast %54 : vector<8x1xf32> to vector<8x8xf32>
    %56 = arith.mulf %51, %55 : vector<8x8xf32>
    %cst_28 = arith.constant dense<0.000000e+00> : vector<8x8xf32>
    %57 = tpu.matmul %56, %39, %cst_28 {dimension_numbers = #tpu.dot_dimension_numbers<[1], [0], [0], [1], [0, 0, 1, 1], [], []>} : vector<8x8xf32>, vector<8x8xf32>, vector<8x8xf32> -> vector<8x8xf32>
    %58 = vector.extract_strided_slice %30 {offsets = [0, 8], sizes = [8, 8], strides = [1, 1]} : vector<8x32xf32> to vector<8x8xf32>
    %59 = vector.extract_strided_slice %33 {offsets = [0, 8], sizes = [8, 8], strides = [1, 1]} : vector<8x32xf32> to vector<8x8xf32>
    %60 = vector.extract_strided_slice %34 {offsets = [0, 8], sizes = [8, 8], strides = [1, 1]} : vector<8x32xf32> to vector<8x8xf32>
    %cst_29 = arith.constant dense<0.000000e+00> : vector<8x8xf32>
    %61 = tpu.matmul %58, %59, %cst_29 {dimension_numbers = #tpu.dot_dimension_numbers<[1], [1], [0], [0], [0, 0, 1, 0], [], []>} : vector<8x8xf32>, vector<8x8xf32>, vector<8x8xf32> -> vector<8x8xf32>
    %cst_30 = arith.constant 0.353553385 : f32
    %62 = vector.broadcast %cst_30 : f32 to vector<8x8xf32>
    %63 = arith.mulf %61, %62 : vector<8x8xf32>
    %cst_31 = arith.constant 0.000000e+00 : f32
    %64 = vector.broadcast %cst_31 : f32 to vector<8x8xf32>
    %65 = arith.cmpf oeq, %36, %64 : vector<8x8xf32>
    %cst_32 = arith.constant -1.000000e+09 : f32
    %66 = vector.broadcast %cst_32 : f32 to vector<8x8xf32>
    %67 = arith.select %65, %66, %63 : vector<8x8xi1>, vector<8x8xf32>
    %cst_33 = arith.constant dense<0xFF800000> : vector<8xf32>
    %68 = vector.multi_reduction <maximumf>, %67, %cst_33 [1] : vector<8x8xf32> to vector<8xf32>
    %69 = vector.shape_cast %68 : vector<8xf32> to vector<8x1xf32>
    %70 = vector.broadcast %69 : vector<8x1xf32> to vector<8x8xf32>
    %71 = arith.subf %67, %70 : vector<8x8xf32>
    %72 = math.exp %71 : vector<8x8xf32>
    %cst_34 = arith.constant dense<0.000000e+00> : vector<8xf32>
    %73 = vector.multi_reduction <add>, %72, %cst_34 [1] : vector<8x8xf32> to vector<8xf32>
    %74 = vector.shape_cast %73 : vector<8xf32> to vector<8x1xf32>
    %75 = tpu.reciprocal %74 {approx = true} : vector<8x1xf32> -> vector<8x1xf32>
    %76 = vector.broadcast %75 : vector<8x1xf32> to vector<8x8xf32>
    %77 = arith.mulf %72, %76 : vector<8x8xf32>
    %cst_35 = arith.constant dense<0.000000e+00> : vector<8x8xf32>
    %78 = tpu.matmul %77, %60, %cst_35 {dimension_numbers = #tpu.dot_dimension_numbers<[1], [0], [0], [1], [0, 0, 1, 1], [], []>} : vector<8x8xf32>, vector<8x8xf32>, vector<8x8xf32> -> vector<8x8xf32>
    %79 = vector.extract_strided_slice %30 {offsets = [0, 16], sizes = [8, 8], strides = [1, 1]} : vector<8x32xf32> to vector<8x8xf32>
    %80 = vector.extract_strided_slice %33 {offsets = [0, 16], sizes = [8, 8], strides = [1, 1]} : vector<8x32xf32> to vector<8x8xf32>
    %81 = vector.extract_strided_slice %34 {offsets = [0, 16], sizes = [8, 8], strides = [1, 1]} : vector<8x32xf32> to vector<8x8xf32>
    %cst_36 = arith.constant dense<0.000000e+00> : vector<8x8xf32>
    %82 = tpu.matmul %79, %80, %cst_36 {dimension_numbers = #tpu.dot_dimension_numbers<[1], [1], [0], [0], [0, 0, 1, 0], [], []>} : vector<8x8xf32>, vector<8x8xf32>, vector<8x8xf32> -> vector<8x8xf32>
    %cst_37 = arith.constant 0.353553385 : f32
    %83 = vector.broadcast %cst_37 : f32 to vector<8x8xf32>
    %84 = arith.mulf %82, %83 : vector<8x8xf32>
    %cst_38 = arith.constant 0.000000e+00 : f32
    %85 = vector.broadcast %cst_38 : f32 to vector<8x8xf32>
    %86 = arith.cmpf oeq, %36, %85 : vector<8x8xf32>
    %cst_39 = arith.constant -1.000000e+09 : f32
    %87 = vector.broadcast %cst_39 : f32 to vector<8x8xf32>
    %88 = arith.select %86, %87, %84 : vector<8x8xi1>, vector<8x8xf32>
    %cst_40 = arith.constant dense<0xFF800000> : vector<8xf32>
    %89 = vector.multi_reduction <maximumf>, %88, %cst_40 [1] : vector<8x8xf32> to vector<8xf32>
    %90 = vector.shape_cast %89 : vector<8xf32> to vector<8x1xf32>
    %91 = vector.broadcast %90 : vector<8x1xf32> to vector<8x8xf32>
    %92 = arith.subf %88, %91 : vector<8x8xf32>
    %93 = math.exp %92 : vector<8x8xf32>
    %cst_41 = arith.constant dense<0.000000e+00> : vector<8xf32>
    %94 = vector.multi_reduction <add>, %93, %cst_41 [1] : vector<8x8xf32> to vector<8xf32>
    %95 = vector.shape_cast %94 : vector<8xf32> to vector<8x1xf32>
    %96 = tpu.reciprocal %95 {approx = true} : vector<8x1xf32> -> vector<8x1xf32>
    %97 = vector.broadcast %96 : vector<8x1xf32> to vector<8x8xf32>
    %98 = arith.mulf %93, %97 : vector<8x8xf32>
    %cst_42 = arith.constant dense<0.000000e+00> : vector<8x8xf32>
    %99 = tpu.matmul %98, %81, %cst_42 {dimension_numbers = #tpu.dot_dimension_numbers<[1], [0], [0], [1], [0, 0, 1, 1], [], []>} : vector<8x8xf32>, vector<8x8xf32>, vector<8x8xf32> -> vector<8x8xf32>
    %100 = vector.extract_strided_slice %30 {offsets = [0, 24], sizes = [8, 8], strides = [1, 1]} : vector<8x32xf32> to vector<8x8xf32>
    %101 = vector.extract_strided_slice %33 {offsets = [0, 24], sizes = [8, 8], strides = [1, 1]} : vector<8x32xf32> to vector<8x8xf32>
    %102 = vector.extract_strided_slice %34 {offsets = [0, 24], sizes = [8, 8], strides = [1, 1]} : vector<8x32xf32> to vector<8x8xf32>
    %cst_43 = arith.constant dense<0.000000e+00> : vector<8x8xf32>
    %103 = tpu.matmul %100, %101, %cst_43 {dimension_numbers = #tpu.dot_dimension_numbers<[1], [1], [0], [0], [0, 0, 1, 0], [], []>} : vector<8x8xf32>, vector<8x8xf32>, vector<8x8xf32> -> vector<8x8xf32>
    %cst_44 = arith.constant 0.353553385 : f32
    %104 = vector.broadcast %cst_44 : f32 to vector<8x8xf32>
    %105 = arith.mulf %103, %104 : vector<8x8xf32>
    %cst_45 = arith.constant 0.000000e+00 : f32
    %106 = vector.broadcast %cst_45 : f32 to vector<8x8xf32>
    %107 = arith.cmpf oeq, %36, %106 : vector<8x8xf32>
    %cst_46 = arith.constant -1.000000e+09 : f32
    %108 = vector.broadcast %cst_46 : f32 to vector<8x8xf32>
    %109 = arith.select %107, %108, %105 : vector<8x8xi1>, vector<8x8xf32>
    %cst_47 = arith.constant dense<0xFF800000> : vector<8xf32>
    %110 = vector.multi_reduction <maximumf>, %109, %cst_47 [1] : vector<8x8xf32> to vector<8xf32>
    %111 = vector.shape_cast %110 : vector<8xf32> to vector<8x1xf32>
    %112 = vector.broadcast %111 : vector<8x1xf32> to vector<8x8xf32>
    %113 = arith.subf %109, %112 : vector<8x8xf32>
    %114 = math.exp %113 : vector<8x8xf32>
    %cst_48 = arith.constant dense<0.000000e+00> : vector<8xf32>
    %115 = vector.multi_reduction <add>, %114, %cst_48 [1] : vector<8x8xf32> to vector<8xf32>
    %116 = vector.shape_cast %115 : vector<8xf32> to vector<8x1xf32>
    %117 = tpu.reciprocal %116 {approx = true} : vector<8x1xf32> -> vector<8x1xf32>
    %118 = vector.broadcast %117 : vector<8x1xf32> to vector<8x8xf32>
    %119 = arith.mulf %114, %118 : vector<8x8xf32>
    %cst_49 = arith.constant dense<0.000000e+00> : vector<8x8xf32>
    %120 = tpu.matmul %119, %102, %cst_49 {dimension_numbers = #tpu.dot_dimension_numbers<[1], [0], [0], [1], [0, 0, 1, 1], [], []>} : vector<8x8xf32>, vector<8x8xf32>, vector<8x8xf32> -> vector<8x8xf32>
    %121 = tpu.concatenate %57, %78, %99, %120 in 1 : vector<8x8xf32>, vector<8x8xf32>, vector<8x8xf32>, vector<8x8xf32> -> vector<8x32xf32>
    %c0_50 = arith.constant 0 : index
    %c0_51 = arith.constant 0 : index
    %122 = vector.load %arg8[%c0_50, %c0_51] : memref<32x32xf32, #tpu.memory_space<vmem>>, vector<32x32xf32>
    %cst_52 = arith.constant dense<0.000000e+00> : vector<8x32xf32>
    %123 = tpu.matmul %121, %122, %cst_52 {dimension_numbers = #tpu.dot_dimension_numbers<[1], [0], [0], [1], [0, 0, 1, 1], [], []>} : vector<8x32xf32>, vector<32x32xf32>, vector<8x32xf32> -> vector<8x32xf32>
    %124 = arith.addf %1, %123 : vector<8x32xf32>
    %c0_53 = arith.constant 0 : index
    %c0_54 = arith.constant 0 : index
    %c0_55 = arith.constant 0 : index
    %125 = vector.load %arg9[%c0_53, %c0_54, %c0_55] : memref<1x8x32xf32, #tpu.memory_space<vmem>>, vector<1x8x32xf32>
    %126 = vector.shape_cast %125 : vector<1x8x32xf32> to vector<8x32xf32>
    %127 = vector.shape_cast %124 : vector<8x32xf32> to vector<1x8x32xf32>
    tpu.vector_store %arg9[%c0_53, %c0_54, %c0_55], %127 {strides = array<i32>} : memref<1x8x32xf32, #tpu.memory_space<vmem>>, vector<1x8x32xf32>,
    return
  }
  func.func @transform_0(%arg0: i32) -> (i32, i32, i32) {
    %c0_i32 = arith.constant 0 : i32
    %c0_i32_0 = arith.constant 0 : i32
    %c0_i32_1 = arith.constant 0 : i32
    return %arg0, %c0_i32, %c0_i32_0 : i32, i32, i32
  }
  func.func @transform_1(%arg0: i32) -> (i32, i32, i32) {
    %c0_i32 = arith.constant 0 : i32
    %c0_i32_0 = arith.constant 0 : i32
    %c0_i32_1 = arith.constant 0 : i32
    return %arg0, %c0_i32, %c0_i32_0 : i32, i32, i32
  }
  func.func @transform_2(%arg0: i32) -> (i32, i32, i32) {
    %c0_i32 = arith.constant 0 : i32
    %c0_i32_0 = arith.constant 0 : i32
    %c0_i32_1 = arith.constant 0 : i32
    return %arg0, %c0_i32, %c0_i32_0 : i32, i32, i32
  }
  func.func @transform_3(%arg0: i32) -> (i32, i32) {
    %c0_i32 = arith.constant 0 : i32
    %c0_i32_0 = arith.constant 0 : i32
    %c0_i32_1 = arith.constant 0 : i32
    return %c0_i32, %c0_i32_0 : i32, i32
  }
  func.func @transform_4(%arg0: i32) -> (i32, i32) {
    %c0_i32 = arith.constant 0 : i32
    %c0_i32_0 = arith.constant 0 : i32
    %c0_i32_1 = arith.constant 0 : i32
    return %c0_i32, %c0_i32_0 : i32, i32
  }
  func.func @transform_5(%arg0: i32) -> (i32, i32) {
    %c0_i32 = arith.constant 0 : i32
    %c0_i32_0 = arith.constant 0 : i32
    %c0_i32_1 = arith.constant 0 : i32
    return %c0_i32, %c0_i32_0 : i32, i32
  }
  func.func @transform_6(%arg0: i32) -> (i32, i32) {
    %c0_i32 = arith.constant 0 : i32
    %c0_i32_0 = arith.constant 0 : i32
    %c0_i32_1 = arith.constant 0 : i32
    return %c0_i32, %c0_i32_0 : i32, i32
  }
  func.func @transform_7(%arg0: i32) -> (i32, i32) {
    %c0_i32 = arith.constant 0 : i32
    %c0_i32_0 = arith.constant 0 : i32
    %c0_i32_1 = arith.constant 0 : i32
    return %c0_i32, %c0_i32_0 : i32, i32
  }
  func.func @transform_8(%arg0: i32) -> (i32, i32, i32) {
    %c0_i32 = arith.constant 0 : i32
    %c0_i32_0 = arith.constant 0 : i32
    %c0_i32_1 = arith.constant 0 : i32
    return %arg0, %c0_i32, %c0_i32_0 : i32, i32, i32
  }
}

module attributes {stable_mosaic.version = 11 : i64} {
  func.func @_self_attn_block_kernel(%arg0: i32, %arg1: memref<1x8x32xf32, #tpu.memory_space<vmem>>, %arg2: memref<1x8x8xf32, #tpu.memory_space<vmem>>, %arg3: memref<1x32xf32, #tpu.memory_space<vmem>>, %arg4: memref<1x32xf32, #tpu.memory_space<vmem>>, %arg5: memref<32x96xf32, #tpu.memory_space<vmem>>, %arg6: memref<32x32xf32, #tpu.memory_space<vmem>>, %arg7: memref<1x8x32xf32, #tpu.memory_space<vmem>>) attributes {dimension_semantics = [#tpu.dimension_semantics<parallel>], iteration_bounds = array<i64: 2>, scalar_prefetch = 0 : i64, scratch_operands = 0 : i64, tpu.core_type = #tpu.core_type<tc>, window_params = [{transform_indices = @transform_0, window_bounds = array<i64: 1, 8, 32>}, {transform_indices = @transform_1, window_bounds = array<i64: 1, 8, 8>}, {pipeline_mode = #tpu.pipeline_mode<synchronous>, transform_indices = @transform_2, window_bounds = array<i64: 1, 32>}, {pipeline_mode = #tpu.pipeline_mode<synchronous>, transform_indices = @transform_3, window_bounds = array<i64: 1, 32>}, {pipeline_mode = #tpu.pipeline_mode<synchronous>, transform_indices = @transform_4, window_bounds = array<i64: 32, 96>}, {pipeline_mode = #tpu.pipeline_mode<synchronous>, transform_indices = @transform_5, window_bounds = array<i64: 32, 32>}, {transform_indices = @transform_6, window_bounds = array<i64: 1, 8, 32>}]} {
    %c0 = arith.constant 0 : index
    %c0_0 = arith.constant 0 : index
    %c0_1 = arith.constant 0 : index
    %0 = vector.load %arg1[%c0, %c0_0, %c0_1] : memref<1x8x32xf32, #tpu.memory_space<vmem>>, vector<1x8x32xf32>
    %1 = vector.shape_cast %0 : vector<1x8x32xf32> to vector<8x32xf32>
    %c0_2 = arith.constant 0 : index
    %c0_3 = arith.constant 0 : index
    %2 = vector.load %arg3[%c0_2, %c0_3] : memref<1x32xf32, #tpu.memory_space<vmem>>, vector<1x32xf32>
    %c0_4 = arith.constant 0 : index
    %c0_5 = arith.constant 0 : index
    %3 = vector.load %arg4[%c0_4, %c0_5] : memref<1x32xf32, #tpu.memory_space<vmem>>, vector<1x32xf32>
    %cst = arith.constant dense<0.000000e+00> : vector<8xf32>
    %4 = vector.multi_reduction <add>, %1, %cst [1] : vector<8x32xf32> to vector<8xf32>
    %5 = vector.shape_cast %4 : vector<8xf32> to vector<8x1xf32>
    %cst_6 = arith.constant 3.200000e+01 : f32
    %6 = vector.broadcast %cst_6 : f32 to vector<8x1xf32>
    %7 = arith.divf %5, %6 : vector<8x1xf32>
    %8 = vector.broadcast %7 : vector<8x1xf32> to vector<8x32xf32>
    %9 = arith.subf %1, %8 : vector<8x32xf32>
    %10 = arith.mulf %9, %9 : vector<8x32xf32>
    %cst_7 = arith.constant dense<0.000000e+00> : vector<8xf32>
    %11 = vector.multi_reduction <add>, %10, %cst_7 [1] : vector<8x32xf32> to vector<8xf32>
    %12 = vector.shape_cast %11 : vector<8xf32> to vector<8x1xf32>
    %cst_8 = arith.constant 0.0322580636 : f32
    %13 = vector.broadcast %cst_8 : f32 to vector<8x1xf32>
    %14 = arith.mulf %12, %13 : vector<8x1xf32>
    %15 = math.sqrt %14 : vector<8x1xf32>
    %cst_9 = arith.constant 9.99999997E-7 : f32
    %16 = vector.broadcast %cst_9 : f32 to vector<8x1xf32>
    %17 = arith.addf %15, %16 : vector<8x1xf32>
    %18 = tpu.reciprocal %17 {approx = true} : vector<8x1xf32> -> vector<8x1xf32>
    %19 = vector.broadcast %7 : vector<8x1xf32> to vector<8x32xf32>
    %20 = arith.subf %1, %19 : vector<8x32xf32>
    %21 = vector.broadcast %2 : vector<1x32xf32> to vector<8x32xf32>
    %22 = arith.mulf %21, %20 : vector<8x32xf32>
    %23 = vector.broadcast %18 : vector<8x1xf32> to vector<8x32xf32>
    %24 = arith.mulf %22, %23 : vector<8x32xf32>
    %25 = vector.broadcast %3 : vector<1x32xf32> to vector<8x32xf32>
    %26 = arith.addf %24, %25 : vector<8x32xf32>
    %c0_10 = arith.constant 0 : index
    %c0_11 = arith.constant 0 : index
    %27 = vector.load %arg5[%c0_10, %c0_11] : memref<32x96xf32, #tpu.memory_space<vmem>>, vector<32x96xf32>
    %cst_12 = arith.constant dense<0.000000e+00> : vector<8x96xf32>
    %28 = tpu.matmul %26, %27, %cst_12 {dimension_numbers = #tpu.dot_dimension_numbers<[1], [0], [0], [1], [0, 0, 1, 1], [], []>} : vector<8x32xf32>, vector<32x96xf32>, vector<8x96xf32> -> vector<8x96xf32>
    %29 = vector.extract_strided_slice %28 {offsets = [0, 0], sizes = [8, 32], strides = [1, 1]} : vector<8x96xf32> to vector<8x32xf32>
    %30 = vector.extract_strided_slice %28 {offsets = [0, 32], sizes = [8, 32], strides = [1, 1]} : vector<8x96xf32> to vector<8x32xf32>
    %31 = vector.extract_strided_slice %28 {offsets = [0, 64], sizes = [8, 32], strides = [1, 1]} : vector<8x96xf32> to vector<8x32xf32>
    %c0_13 = arith.constant 0 : index
    %c0_14 = arith.constant 0 : index
    %c0_15 = arith.constant 0 : index
    %32 = vector.load %arg2[%c0_13, %c0_14, %c0_15] : memref<1x8x8xf32, #tpu.memory_space<vmem>>, vector<1x8x8xf32>
    %33 = vector.shape_cast %32 : vector<1x8x8xf32> to vector<8x8xf32>
    %34 = vector.extract_strided_slice %29 {offsets = [0, 0], sizes = [8, 8], strides = [1, 1]} : vector<8x32xf32> to vector<8x8xf32>
    %35 = vector.extract_strided_slice %30 {offsets = [0, 0], sizes = [8, 8], strides = [1, 1]} : vector<8x32xf32> to vector<8x8xf32>
    %36 = vector.extract_strided_slice %31 {offsets = [0, 0], sizes = [8, 8], strides = [1, 1]} : vector<8x32xf32> to vector<8x8xf32>
    %cst_16 = arith.constant dense<0.000000e+00> : vector<8x8xf32>
    %37 = tpu.matmul %34, %35, %cst_16 {dimension_numbers = #tpu.dot_dimension_numbers<[1], [1], [0], [0], [0, 0, 1, 0], [], []>} : vector<8x8xf32>, vector<8x8xf32>, vector<8x8xf32> -> vector<8x8xf32>
    %cst_17 = arith.constant 0.353553385 : f32
    %38 = vector.broadcast %cst_17 : f32 to vector<8x8xf32>
    %39 = arith.mulf %37, %38 : vector<8x8xf32>
    %cst_18 = arith.constant 0.000000e+00 : f32
    %40 = vector.broadcast %cst_18 : f32 to vector<8x8xf32>
    %41 = arith.cmpf oeq, %33, %40 : vector<8x8xf32>
    %cst_19 = arith.constant -1.000000e+09 : f32
    %42 = vector.broadcast %cst_19 : f32 to vector<8x8xf32>
    %43 = arith.select %41, %42, %39 : vector<8x8xi1>, vector<8x8xf32>
    %cst_20 = arith.constant dense<0xFF800000> : vector<8xf32>
    %44 = vector.multi_reduction <maximumf>, %43, %cst_20 [1] : vector<8x8xf32> to vector<8xf32>
    %45 = vector.shape_cast %44 : vector<8xf32> to vector<8x1xf32>
    %46 = vector.broadcast %45 : vector<8x1xf32> to vector<8x8xf32>
    %47 = arith.subf %43, %46 : vector<8x8xf32>
    %48 = math.exp %47 : vector<8x8xf32>
    %cst_21 = arith.constant dense<0.000000e+00> : vector<8xf32>
    %49 = vector.multi_reduction <add>, %48, %cst_21 [1] : vector<8x8xf32> to vector<8xf32>
    %50 = vector.shape_cast %49 : vector<8xf32> to vector<8x1xf32>
    %51 = tpu.reciprocal %50 {approx = true} : vector<8x1xf32> -> vector<8x1xf32>
    %52 = vector.broadcast %51 : vector<8x1xf32> to vector<8x8xf32>
    %53 = arith.mulf %48, %52 : vector<8x8xf32>
    %cst_22 = arith.constant dense<0.000000e+00> : vector<8x8xf32>
    %54 = tpu.matmul %53, %36, %cst_22 {dimension_numbers = #tpu.dot_dimension_numbers<[1], [0], [0], [1], [0, 0, 1, 1], [], []>} : vector<8x8xf32>, vector<8x8xf32>, vector<8x8xf32> -> vector<8x8xf32>
    %55 = vector.extract_strided_slice %29 {offsets = [0, 8], sizes = [8, 8], strides = [1, 1]} : vector<8x32xf32> to vector<8x8xf32>
    %56 = vector.extract_strided_slice %30 {offsets = [0, 8], sizes = [8, 8], strides = [1, 1]} : vector<8x32xf32> to vector<8x8xf32>
    %57 = vector.extract_strided_slice %31 {offsets = [0, 8], sizes = [8, 8], strides = [1, 1]} : vector<8x32xf32> to vector<8x8xf32>
    %cst_23 = arith.constant dense<0.000000e+00> : vector<8x8xf32>
    %58 = tpu.matmul %55, %56, %cst_23 {dimension_numbers = #tpu.dot_dimension_numbers<[1], [1], [0], [0], [0, 0, 1, 0], [], []>} : vector<8x8xf32>, vector<8x8xf32>, vector<8x8xf32> -> vector<8x8xf32>
    %cst_24 = arith.constant 0.353553385 : f32
    %59 = vector.broadcast %cst_24 : f32 to vector<8x8xf32>
    %60 = arith.mulf %58, %59 : vector<8x8xf32>
    %cst_25 = arith.constant 0.000000e+00 : f32
    %61 = vector.broadcast %cst_25 : f32 to vector<8x8xf32>
    %62 = arith.cmpf oeq, %33, %61 : vector<8x8xf32>
    %cst_26 = arith.constant -1.000000e+09 : f32
    %63 = vector.broadcast %cst_26 : f32 to vector<8x8xf32>
    %64 = arith.select %62, %63, %60 : vector<8x8xi1>, vector<8x8xf32>
    %cst_27 = arith.constant dense<0xFF800000> : vector<8xf32>
    %65 = vector.multi_reduction <maximumf>, %64, %cst_27 [1] : vector<8x8xf32> to vector<8xf32>
    %66 = vector.shape_cast %65 : vector<8xf32> to vector<8x1xf32>
    %67 = vector.broadcast %66 : vector<8x1xf32> to vector<8x8xf32>
    %68 = arith.subf %64, %67 : vector<8x8xf32>
    %69 = math.exp %68 : vector<8x8xf32>
    %cst_28 = arith.constant dense<0.000000e+00> : vector<8xf32>
    %70 = vector.multi_reduction <add>, %69, %cst_28 [1] : vector<8x8xf32> to vector<8xf32>
    %71 = vector.shape_cast %70 : vector<8xf32> to vector<8x1xf32>
    %72 = tpu.reciprocal %71 {approx = true} : vector<8x1xf32> -> vector<8x1xf32>
    %73 = vector.broadcast %72 : vector<8x1xf32> to vector<8x8xf32>
    %74 = arith.mulf %69, %73 : vector<8x8xf32>
    %cst_29 = arith.constant dense<0.000000e+00> : vector<8x8xf32>
    %75 = tpu.matmul %74, %57, %cst_29 {dimension_numbers = #tpu.dot_dimension_numbers<[1], [0], [0], [1], [0, 0, 1, 1], [], []>} : vector<8x8xf32>, vector<8x8xf32>, vector<8x8xf32> -> vector<8x8xf32>
    %76 = vector.extract_strided_slice %29 {offsets = [0, 16], sizes = [8, 8], strides = [1, 1]} : vector<8x32xf32> to vector<8x8xf32>
    %77 = vector.extract_strided_slice %30 {offsets = [0, 16], sizes = [8, 8], strides = [1, 1]} : vector<8x32xf32> to vector<8x8xf32>
    %78 = vector.extract_strided_slice %31 {offsets = [0, 16], sizes = [8, 8], strides = [1, 1]} : vector<8x32xf32> to vector<8x8xf32>
    %cst_30 = arith.constant dense<0.000000e+00> : vector<8x8xf32>
    %79 = tpu.matmul %76, %77, %cst_30 {dimension_numbers = #tpu.dot_dimension_numbers<[1], [1], [0], [0], [0, 0, 1, 0], [], []>} : vector<8x8xf32>, vector<8x8xf32>, vector<8x8xf32> -> vector<8x8xf32>
    %cst_31 = arith.constant 0.353553385 : f32
    %80 = vector.broadcast %cst_31 : f32 to vector<8x8xf32>
    %81 = arith.mulf %79, %80 : vector<8x8xf32>
    %cst_32 = arith.constant 0.000000e+00 : f32
    %82 = vector.broadcast %cst_32 : f32 to vector<8x8xf32>
    %83 = arith.cmpf oeq, %33, %82 : vector<8x8xf32>
    %cst_33 = arith.constant -1.000000e+09 : f32
    %84 = vector.broadcast %cst_33 : f32 to vector<8x8xf32>
    %85 = arith.select %83, %84, %81 : vector<8x8xi1>, vector<8x8xf32>
    %cst_34 = arith.constant dense<0xFF800000> : vector<8xf32>
    %86 = vector.multi_reduction <maximumf>, %85, %cst_34 [1] : vector<8x8xf32> to vector<8xf32>
    %87 = vector.shape_cast %86 : vector<8xf32> to vector<8x1xf32>
    %88 = vector.broadcast %87 : vector<8x1xf32> to vector<8x8xf32>
    %89 = arith.subf %85, %88 : vector<8x8xf32>
    %90 = math.exp %89 : vector<8x8xf32>
    %cst_35 = arith.constant dense<0.000000e+00> : vector<8xf32>
    %91 = vector.multi_reduction <add>, %90, %cst_35 [1] : vector<8x8xf32> to vector<8xf32>
    %92 = vector.shape_cast %91 : vector<8xf32> to vector<8x1xf32>
    %93 = tpu.reciprocal %92 {approx = true} : vector<8x1xf32> -> vector<8x1xf32>
    %94 = vector.broadcast %93 : vector<8x1xf32> to vector<8x8xf32>
    %95 = arith.mulf %90, %94 : vector<8x8xf32>
    %cst_36 = arith.constant dense<0.000000e+00> : vector<8x8xf32>
    %96 = tpu.matmul %95, %78, %cst_36 {dimension_numbers = #tpu.dot_dimension_numbers<[1], [0], [0], [1], [0, 0, 1, 1], [], []>} : vector<8x8xf32>, vector<8x8xf32>, vector<8x8xf32> -> vector<8x8xf32>
    %97 = vector.extract_strided_slice %29 {offsets = [0, 24], sizes = [8, 8], strides = [1, 1]} : vector<8x32xf32> to vector<8x8xf32>
    %98 = vector.extract_strided_slice %30 {offsets = [0, 24], sizes = [8, 8], strides = [1, 1]} : vector<8x32xf32> to vector<8x8xf32>
    %99 = vector.extract_strided_slice %31 {offsets = [0, 24], sizes = [8, 8], strides = [1, 1]} : vector<8x32xf32> to vector<8x8xf32>
    %cst_37 = arith.constant dense<0.000000e+00> : vector<8x8xf32>
    %100 = tpu.matmul %97, %98, %cst_37 {dimension_numbers = #tpu.dot_dimension_numbers<[1], [1], [0], [0], [0, 0, 1, 0], [], []>} : vector<8x8xf32>, vector<8x8xf32>, vector<8x8xf32> -> vector<8x8xf32>
    %cst_38 = arith.constant 0.353553385 : f32
    %101 = vector.broadcast %cst_38 : f32 to vector<8x8xf32>
    %102 = arith.mulf %100, %101 : vector<8x8xf32>
    %cst_39 = arith.constant 0.000000e+00 : f32
    %103 = vector.broadcast %cst_39 : f32 to vector<8x8xf32>
    %104 = arith.cmpf oeq, %33, %103 : vector<8x8xf32>
    %cst_40 = arith.constant -1.000000e+09 : f32
    %105 = vector.broadcast %cst_40 : f32 to vector<8x8xf32>
    %106 = arith.select %104, %105, %102 : vector<8x8xi1>, vector<8x8xf32>
    %cst_41 = arith.constant dense<0xFF800000> : vector<8xf32>
    %107 = vector.multi_reduction <maximumf>, %106, %cst_41 [1] : vector<8x8xf32> to vector<8xf32>
    %108 = vector.shape_cast %107 : vector<8xf32> to vector<8x1xf32>
    %109 = vector.broadcast %108 : vector<8x1xf32> to vector<8x8xf32>
    %110 = arith.subf %106, %109 : vector<8x8xf32>
    %111 = math.exp %110 : vector<8x8xf32>
    %cst_42 = arith.constant dense<0.000000e+00> : vector<8xf32>
    %112 = vector.multi_reduction <add>, %111, %cst_42 [1] : vector<8x8xf32> to vector<8xf32>
    %113 = vector.shape_cast %112 : vector<8xf32> to vector<8x1xf32>
    %114 = tpu.reciprocal %113 {approx = true} : vector<8x1xf32> -> vector<8x1xf32>
    %115 = vector.broadcast %114 : vector<8x1xf32> to vector<8x8xf32>
    %116 = arith.mulf %111, %115 : vector<8x8xf32>
    %cst_43 = arith.constant dense<0.000000e+00> : vector<8x8xf32>
    %117 = tpu.matmul %116, %99, %cst_43 {dimension_numbers = #tpu.dot_dimension_numbers<[1], [0], [0], [1], [0, 0, 1, 1], [], []>} : vector<8x8xf32>, vector<8x8xf32>, vector<8x8xf32> -> vector<8x8xf32>
    %118 = tpu.concatenate %54, %75, %96, %117 in 1 : vector<8x8xf32>, vector<8x8xf32>, vector<8x8xf32>, vector<8x8xf32> -> vector<8x32xf32>
    %c0_44 = arith.constant 0 : index
    %c0_45 = arith.constant 0 : index
    %119 = vector.load %arg6[%c0_44, %c0_45] : memref<32x32xf32, #tpu.memory_space<vmem>>, vector<32x32xf32>
    %cst_46 = arith.constant dense<0.000000e+00> : vector<8x32xf32>
    %120 = tpu.matmul %118, %119, %cst_46 {dimension_numbers = #tpu.dot_dimension_numbers<[1], [0], [0], [1], [0, 0, 1, 1], [], []>} : vector<8x32xf32>, vector<32x32xf32>, vector<8x32xf32> -> vector<8x32xf32>
    %121 = arith.addf %1, %120 : vector<8x32xf32>
    %c0_47 = arith.constant 0 : index
    %c0_48 = arith.constant 0 : index
    %c0_49 = arith.constant 0 : index
    %122 = vector.load %arg7[%c0_47, %c0_48, %c0_49] : memref<1x8x32xf32, #tpu.memory_space<vmem>>, vector<1x8x32xf32>
    %123 = vector.shape_cast %122 : vector<1x8x32xf32> to vector<8x32xf32>
    %124 = vector.shape_cast %121 : vector<8x32xf32> to vector<1x8x32xf32>
    tpu.vector_store %arg7[%c0_47, %c0_48, %c0_49], %124 {strides = array<i32>} : memref<1x8x32xf32, #tpu.memory_space<vmem>>, vector<1x8x32xf32>,
    return
  }
  func.func @transform_0(%arg0: i32) -> (i32, i32, i32) {
    %c0_i32 = arith.constant 0 : i32
    %c0_i32_0 = arith.constant 0 : i32
    %c0_i32_1 = arith.constant 0 : i32
    return %arg0, %c0_i32, %c0_i32_0 : i32, i32, i32
  }
  func.func @transform_1(%arg0: i32) -> (i32, i32, i32) {
    %c0_i32 = arith.constant 0 : i32
    %c0_i32_0 = arith.constant 0 : i32
    %c0_i32_1 = arith.constant 0 : i32
    return %arg0, %c0_i32, %c0_i32_0 : i32, i32, i32
  }
  func.func @transform_2(%arg0: i32) -> (i32, i32) {
    %c0_i32 = arith.constant 0 : i32
    %c0_i32_0 = arith.constant 0 : i32
    %c0_i32_1 = arith.constant 0 : i32
    return %c0_i32, %c0_i32_0 : i32, i32
  }
  func.func @transform_3(%arg0: i32) -> (i32, i32) {
    %c0_i32 = arith.constant 0 : i32
    %c0_i32_0 = arith.constant 0 : i32
    %c0_i32_1 = arith.constant 0 : i32
    return %c0_i32, %c0_i32_0 : i32, i32
  }
  func.func @transform_4(%arg0: i32) -> (i32, i32) {
    %c0_i32 = arith.constant 0 : i32
    %c0_i32_0 = arith.constant 0 : i32
    %c0_i32_1 = arith.constant 0 : i32
    return %c0_i32, %c0_i32_0 : i32, i32
  }
  func.func @transform_5(%arg0: i32) -> (i32, i32) {
    %c0_i32 = arith.constant 0 : i32
    %c0_i32_0 = arith.constant 0 : i32
    %c0_i32_1 = arith.constant 0 : i32
    return %c0_i32, %c0_i32_0 : i32, i32
  }
  func.func @transform_6(%arg0: i32) -> (i32, i32, i32) {
    %c0_i32 = arith.constant 0 : i32
    %c0_i32_0 = arith.constant 0 : i32
    %c0_i32_1 = arith.constant 0 : i32
    return %arg0, %c0_i32, %c0_i32_0 : i32, i32, i32
  }
}

</mosaic_0001>

<bundles_post_ra>
// kernel: decoder_block.5
= control target key start
LH: loop header
LB: loop body
LE: loop exit
PB: predicated region body
PF: predicated region fallthrough
CT: control target
= control target key end

     0   :  { %vm31_vm0 = vcmask 261120   ;;  %s540_s0 = inlined_call_operand.vmem [shape: f32[16,32], index: 0, kind: input, shape index: {}]   ;;  %s541_s1 = inlined_call_operand.vmem [shape: f32[1,32], index: 1, kind: input, shape index: {}]   ;;  %s542_s2 = inlined_call_operand.vmem [shape: f32[1,32], index: 2, kind: input, shape index: {}]   ;;  %s543_s3 = inlined_call_operand.vmem [shape: f32[32,64], index: 3, kind: input, shape index: {}]   ;;  %s544_s4 = inlined_call_operand.vmem [shape: f32[1,64], index: 4, kind: input, shape index: {}]   ;;  %s545_s5 = inlined_call_operand.vmem [shape: f32[64,32], index: 5, kind: input, shape index: {}]   ;;  %s546_s6 = inlined_call_operand.vmem [shape: f32[1,32], index: 6, kind: input, shape index: {}]   ;;  %s547_s7 = inlined_call_operand.hbm [shape: f32[16,32], index: 7, kind: output, shape index: {}]  }
   0x1   :  { %v459_v0 = vld [vmem:[%s540_s0] sm:$0xff]  ;;  %v464_v1 = vld [vmem:[%s540_s0 + $0x8] sm:$0xff] }
   0x2   :  { %v32_v2 = vsel %vm31_vm0, %v459_v0, 0.0 }
   0x3   :  { %12 = vsyncpa [#allocation3], 0  ;;  %33 = vadd.xlane.f32.xlu0 %v32_v2  ;;  %v35_v3 = vsel %vm31_vm0, %v464_v1, 0.0  ;;  %v89_v14 = vld [vmem:[%s543_s3] sm:$0xff]  ;;  %v90_v15 = vld [vmem:[%s543_s3 + $0x8] sm:$0xff]  ;;  %vm198_vm5 = vcmask 523264  }
   0x4   :  { %v91_v16 = vld [vmem:[%s543_s3 + $0x10] sm:$0xff]  ;;  %v354_v17 = vpack.c.bf16 %v90_v15, %v89_v14  ;;  %v92_v18 = vld [vmem:[%s543_s3 + $0x18] sm:$0xff]  ;;  %v183_v20 = vld [vmem:[%s545_s5] sm:$0xff] }
   0x5   :  { %v358_v19 = vpack.c.bf16 %v92_v18, %v91_v16  ;;  %v184_v21 = vld [vmem:[%s545_s5 + $0x8] sm:$0xff]  ;;  %v185_v22 = vld [vmem:[%s545_s5 + $0x10] sm:$0xff]  ;;  %v186_v24 = vld [vmem:[%s545_s5 + $0x18] sm:$0xff] }
   0x6   :  { %355 = vmatprep.subr.bf16.mxu0 %v354_v17  ;;  %v362_v23 = vpack.c.bf16 %v184_v21, %v183_v20  ;;  %v366_v25 = vpack.c.bf16 %v186_v24, %v185_v22  ;;  %v187_v26 = vld [vmem:[%s545_s5 + $0x20] sm:$0xff]  ;;  %v188_v27 = vld [vmem:[%s545_s5 + $0x28] sm:$0xff]  ;;  %v189_v55 = vld [vmem:[%s545_s5 + $0x30] sm:$0xff] }
   0x7   :  { %36 = vadd.xlane.f32.xlu0 %v35_v3  ;;  %357 = vmatpush3.bf16.msra.mxu0 %v354_v17  ;;  %v370_v28 = vpack.c.bf16 %v188_v27, %v187_v26  ;;  %v300_v45 = vld [vmem:[%s541_s1] ss:$0 sm:$0xff]  ;;  %v190_v56 = vld [vmem:[%s545_s5 + $0x38] sm:$0xff]  ;;  %s413_s5 = smov [#allocation2]  }
   0x8   :  { %359 = vmatprep.subr.bf16.mxu0 %v358_v19  ;;  %363 = vmatprep.subr.bf16.mxu1 %v362_v23  ;;  %v301_v48 = vld [vmem:[%s542_s2] ss:$0 sm:$0xff]  ;;  %v374_v57 = vpack.c.bf16 %v190_v56, %v189_v55  ;;  %s289_s9 = sshll.u32 %s413_s5, 4  ;;  %s290_s9 = int_to_ptr.vmem [resolvable:$true] %s289_s9 }
   0x9   :  { %365 = vmatpush3.bf16.msra.mxu1 %v362_v23  ;;  %v302_v58 = vld [vmem:[%s544_s4] ss:$0 sm:$0xff]  ;;  %s389_s4 = scalar_lea.vmem %s290_s9, 256  ;;  %p394_p1 = scmp.lt.s32.totalorder %s290_s9, %s290_s9 }
   0xa   :  { %367 = vmatprep.subr.bf16.mxu1 %v366_v25  ;;  %v305_v3 = vld [vmem:[%s546_s6] ss:$0 sm:$0xff]  ;;  %p390_p0 = scmp.ne.s32.totalorder %s290_s9, %s389_s4  ;;  %p395_p2 = scmp.lt.s32.totalorder %s389_s4, %s389_s4 }
   0xb   :  { %361 = vmatpush3.bf16.msra.mxu0 %v358_v19 }
   0xc   :  { %p396_p3 = por %p395_p2, %p394_p1 }
   0xd   :  { %369 = vmatpush3.bf16.msra.mxu1 %v366_v25 }
   0xe   :  { %371 = vmatprep.subr.bf16.mxu1 %v370_v28  ;;  %p397_p4 = pnand %p396_p3, %p390_p0 }
  0x11   :  { %373 = vmatpush3.bf16.msra.mxu1 %v370_v28 }
  0x12   :  { %375 = vmatprep.subr.bf16.mxu1 %v374_v57 }
  0x15   :  { %377 = vmatpush3.bf16.msra.mxu1 %v374_v57 }
  0x90   :  { %v34_v4 = vpop.xlane.xlu0 %33 }
  0x91   :  { %v39_v5 = vmul.f32 0.03125, %v34_v4 }
  0x93   :  { %v41_v6 = vsub.f32 %v459_v0, %v39_v5 }
  0x94   :  { %v37_v7 = vpop.xlane.xlu0 %36 }
  0x95   :  { %v40_v8 = vmul.f32 0.03125, %v37_v7  ;;  %v43_v9 = vmul.f32 %v41_v6, %v41_v6  ;;  %v77_v46 = vmul.f32 %v300_v45, %v41_v6 }
  0x97   :  { %v42_v10 = vsub.f32 %v464_v1, %v40_v8  ;;  %v45_v11 = vsel %vm31_vm0, %v43_v9, 0.0 }
  0x98   :  { %46 = vadd.xlane.f32.xlu1 %v45_v11 }
  0x99   :  { %v44_v12 = vmul.f32 %v42_v10, %v42_v10  ;;  %v78_v50 = vmul.f32 %v300_v45, %v42_v10 }
  0x9b   :  { %v48_v13 = vsel %vm31_vm0, %v44_v12, 0.0 }
  0x9c   :  { %49 = vadd.xlane.f32.xlu1 %v48_v13 }
 0x125   :  { %v47_v29 = vpop.xlane.xlu1 %46 }
 0x126   :  { %v51_v30 = vmul.f32 0.032258064, %v47_v29 }
 0x128   :  { %381 = vrsqrt.f32 %v51_v30  ;;  %vm55_vm1 = vcmp.eq.f32.partialorder %v51_v30, inf  ;;  %v58_v35 = vand.u32 2147483648, %v51_v30  ;;  %vm57_vm2 = vcmp.eq.f32.partialorder %v51_v30, 0.0 }
 0x129   :  { %v50_v31 = vpop.xlane.xlu1 %49 }
 0x12a   :  { %v52_v32 = vmul.f32 0.032258064, %v50_v31 }
 0x12c   :  { %383 = vrsqrt.f32 %v52_v32  ;;  %vm62_vm3 = vcmp.eq.f32.partialorder %v52_v32, inf  ;;  %v65_v41 = vand.u32 2147483648, %v52_v32  ;;  %vm64_vm4 = vcmp.eq.f32.partialorder %v52_v32, 0.0 }
 0x132   :  { %v382_v33 = vpop.eup %381 }
 0x133   :  { %v54_v34 = vmul.f32 %v382_v33, %v51_v30 }
 0x135   :  { %v56_v36 = vsel %vm55_vm1, %v51_v30, %v54_v34 }
 0x136   :  { %v384_v37 = vpop.eup %383  ;;  %v59_v38 = vsel %vm57_vm2, %v58_v35, %v56_v36 }
 0x137   :  { %v61_v39 = vmul.f32 %v384_v37, %v52_v32  ;;  %v67_v40 = vadd.f32 1e-06, %v59_v38 }
 0x139   :  { %v63_v42 = vsel %vm62_vm3, %v52_v32, %v61_v39  ;;  %385 = vrcp.f32 %v67_v40 }
 0x13a   :  { %v66_v43 = vsel %vm64_vm4, %v65_v41, %v63_v42 }
 0x13b   :  { %v68_v44 = vadd.f32 1e-06, %v66_v43 }
 0x13d   :  { %387 = vrcp.f32 %v68_v44 }
 0x143   :  { %v386_v47 = vpop.eup %385 }
 0x144   :  { %v79_v49 = vmul.f32 %v386_v47, %v77_v46 }
 0x146   :  { %v87_v51 = vadd.f32 %v301_v48, %v79_v49 }
 0x147   :  { %v388_v52 = vpop.eup %387 }
 0x148   :  { %v80_v53 = vmul.f32 %v388_v52, %v78_v50  ;;  %332 = vmatprep.mubr.msk.f32.mxu0 %vm31_vm0, %v87_v51 }
 0x14a   :  { %v88_v54 = vadd.f32 %v301_v48, %v80_v53 }
 0x14c   :  { %333 = vmatmul.mubr.msk.f32.vlgmr.msra.gmra.mrb[0].mxu0 %vm31_vm0, %v88_v54 }
 0x21f   :  { %v334_v59 = vpop.f32.mrb[0].mxu0 }
 0x220   :  { %v178_v60 = vadd.f32 %v334_v59, %v302_v58  ;;  %v172_v61 = vpop.f32.mrb[1].mxu0 }
 0x221   :  { %v173_v62 = vadd.f32 %v302_v58, %v172_v61 }
 0x222   :  { %v182_v2 = vmax.f32 %v178_v60, 0.0 }
 0x223   :  { %v181_v63 = vmax.f32 %v173_v62, 0.0 }
 0x225   :  { %351 = vmatprep.mubr.msk.f32.mxu1 %vm198_vm5, %v181_v63 }
 0x226   :  { %352 = vmatmul.mubr.msk.f32.vlgmr.msra.gmra.mrb[0].mxu1 %vm198_vm5, %v182_v2 }
 0x2f9   :  { %v353_v4 = vpop.f32.mrb[0].mxu1 }
 0x2fa   :  { %v277_v5 = vadd.f32 %v353_v4, %v305_v3  ;;  %v271_v6 = vpop.f32.mrb[1].mxu1 }
 0x2fb   :  { %v272_v7 = vadd.f32 %v305_v3, %v271_v6 }
 0x2fc   :  { %v281_v8 = vadd.f32 %v277_v5, %v464_v1 }
 0x2fd   :  { %v280_v9 = vadd.f32 %v272_v7, %v459_v0 }
 0x2fe   :  { %283 = vst.msk [vmem:[#allocation2 + $0x8] sm:$0xff] %vm31_vm0, %v281_v8 }
 0x2ff   :  { %282 = vst.msk [vmem:[#allocation2] sm:$0xff] %vm31_vm0, %v280_v9 }
 0x300   :  { %400 = shalt.err (!%p397_p4)
}
 0x301   :  { %s401_s11 = scalar_lea.hbm %s547_s7, 256 }
 0x302   :  { %p402_p5 = scmp.ne.s32.totalorder %s547_s7, %s401_s11  ;;  %p405_p6 = scmp.lt.u32.totalorder %s401_s11, %s547_s7 }
 0x304   :  { %p407_p7 = pnand %p405_p6, %p402_p5 }
 0x306   :  { %410 = shalt.err (!%p407_p7)
}
 0x307   :  { %s414_s16 = smov 128   ;;  %s415_s17 = smov 8  }
 0x308   :  { %295 = dma.vmem_to_hbm [thread:$0]  %s290_s9, 256, %s547_s7, [#allocation3], %s414_s16, %s414_s16, %s415_s17  }
 0x309   :  { %411 = dma.done.wait [#allocation3], 256  }
 0x30a   :  { %412 = vsyncadd [#allocation3], 4294967040 }
 0x30b   :  { %299 = vsyncpa [#allocation3], 1 }

// kernel: decoder_block.4
= control target key start
LH: loop header
LB: loop body
LE: loop exit
PB: predicated region body
PF: predicated region fallthrough
CT: control target
= control target key end

     0   :  { %13 = vsyncpa [#allocation3], 0  ;;  %s1998_s0 = inlined_call_operand.vmem [shape: f32[2,8,32], index: 0, kind: input, shape index: {}]   ;;  %s1999_s1 = inlined_call_operand.vmem [shape: f32[2,8,32], index: 1, kind: input, shape index: {}]   ;;  %s2000_s2 = inlined_call_operand.hbm [shape: f32[2,8,8], index: 2, kind: input, shape index: {}]   ;;  %s2001_s3 = inlined_call_operand.vmem [shape: f32[1,32], index: 3, kind: input, shape index: {}]   ;;  %s2002_s4 = inlined_call_operand.vmem [shape: f32[1,32], index: 4, kind: input, shape index: {}]   ;;  %s2003_s5 = inlined_call_operand.vmem [shape: f32[32,32], index: 5, kind: input, shape index: {}]   ;;  %s2004_s6 = inlined_call_operand.vmem [shape: f32[32,64], index: 6, kind: input, shape index: {}]   ;;  %s2005_s7 = inlined_call_operand.vmem [shape: f32[32,32], index: 7, kind: input, shape index: {}]   ;;  %s2006_s8 = inlined_call_operand.vmem [shape: f32[2,8,32], index: 8, kind: output, shape index: {}]  }
   0x1   :  { %15 = vsyncpa [#allocation3 + $0x1], 0  ;;  %s1751_s27 = smov 0   ;;  %s1753_s28 = smov 0  }
   0x2   :  { %s1755_s29 = smov 0   ;;  %s1757_s30 = smov 0  }
   0x3 LB: > { %s1770_s9 = sadd.s32 4294967295, %s1690_s30   ;;  %s1773_s10 = sadd.s32 1, %s1690_s30   ;;  %s1690_s30 = sphi %s1757_s30, %s2014_s30   ;;  %s1686_s29 = sphi %s1755_s29, %s2013_s29   ;;  %s1682_s28 = sphi %s1753_s28, %s2012_s28   ;;  %s1678_s27 = sphi %s1751_s27, %s2011_s27  }
   0x4   : > { %s77_s11 = ssub.s32 %s1690_s30, %s1773_s10  ;;  %s80_s12 = sadd.s32 1, %s1686_s29 }
   0x5   : > { %p78_p0 = scmp.eq.s32.totalorder %s77_s11, 0  ;;  %p87_p1 = scmp.ne.s32.totalorder %s1686_s29, %s1682_s28 }
   0x6   : > { %p88_p2 = scmp.eq.s32.totalorder %s1690_s30, 0  ;;  %p93_p3 = scmp.ne.s32.totalorder %s1682_s28, %s1678_s27 }
   0x7   : > { %s1783_s13 = scalar_select %p78_p0, %s1686_s29, %s80_s12  }
   0x8   : > { %p89_p4 = por %p88_p2, %p87_p1  ;;  %p94_p5 = scmp.eq.s32.totalorder %s1770_s9, 0 }
   0x9   : > { %p1560_p6 = scmp.lt.s32.totalorder %s1690_s30, 2  ;;  %s277_s15 = sand.u32 1, %s1686_s29  }
   0xa   : > { %p1787_p7 = por %p94_p5, %p93_p3  ;;  %s1406_s16 = sshll.u32 %s277_s15, 3 }
   0xb   : > { %s1407_s17 = sshll.u32 %s1690_s30, 7  ;;  %s281_s21 = scalar_lea.vmem [#allocation2], %s1406_s16 }
   0xc   : > { %s1796_s20 = scalar_lea.hbm %s2000_s2, %s1407_s17  ;;  %s288_s22 = sshll.u32 %s281_s21, 4  ;;  %s1798_s22 = int_to_ptr.vmem [resolvable:$true] %s288_s22 }
   0xd   : > { %p1800_p8 = pnand %p1560_p6, %p89_p4  ;;  %s278_s24 = scalar_lea.sflag [#allocation3], %s277_s15 }
   0xe   : > { %s1626_s25 = scalar_lea.hbm %s1796_s20, 128  ;;  %s1631_s11 = scalar_lea.hbm %s2000_s2, 256 }
   0xf   : > { %p1627_p11 = scmp.ne.s32.totalorder %s1796_s20, %s1626_s25  ;;  %p1628_p12 = pneg %p1800_p8 }
  0x10   : > { %p1632_p1 = scmp.lt.u32.totalorder %s1796_s20, %s2000_s2  ;;  %p1633_p2 = scmp.lt.u32.totalorder %s1631_s11, %s1626_s25 }
  0x11   : > { %p1629_p13 = pnand %p1628_p12, %p1627_p11  ;;  %p1635_p4 = scmp.lt.u32.totalorder %s1626_s25, %s1796_s20 }
  0x12   : > { %p1634_p3 = por %p1633_p2, %p1632_p1 }
  0x13   : > { %p1630_p0 = pneg %p1629_p13 }
  0x14   : > { %p1636_p5 = por %p1635_p4, %p1634_p3 }
  0x16   : > { %p1637_p6 = pnand %p1636_p5, %p1630_p0 }
  0x18   : > { %1640 = shalt.err (!%p1637_p6)
}
  0x19   : > { %s1641_s15 = scalar_lea.vmem %s1798_s22, 128  ;;  %s1692_s17 = smov [#allocation2]  }
  0x1a   : > { %p1642_p11 = scmp.ne.s32.totalorder %s1798_s22, %s1641_s15  ;;  %s1646_s18 = sshll.u32 %s1692_s17, 4  ;;  %s1647_s18 = int_to_ptr.vmem [resolvable:$false] %s1646_s18 }
  0x1b   : > { %s1648_s19 = scalar_lea.vmem %s1647_s18, 256  ;;  %p1649_p10 = scmp.lt.s32.totalorder %s1798_s22, %s1647_s18 }
  0x1c   : > { %p1644_p13 = pnand %p1642_p11, %p1628_p12  ;;  %p1650_p1 = scmp.lt.s32.totalorder %s1648_s19, %s1641_s15 }
  0x1e   : > { %p1645_p9 = pneg %p1644_p13  ;;  %p1651_p2 = por %p1650_p1, %p1649_p10 }
  0x20   : > { %p1652_p3 = pnand %p1651_p2, %p1645_p9 }
  0x22   : > { %1655 = shalt.err (!%p1652_p3)
}
  0x23   : > { %1559 = dma.hbm_to_vmem [thread:$0]  (!%p1800_p8), %s1796_s20, 128, %s1798_s22, %s278_s24  }
  0x24   : > { %p2009_p0 = scmp.lt.s32.totalorder %s1690_s30, 3  ;;  %p2010_p4 = scmp.ge.s32.totalorder %s1690_s30, 1 }
  0x26   : > { %p294_p12 = pnand %p2010_p4, %p2009_p0 }
  0x27   : > { %s299_s21 = sand.u32 (!%p294_p12), 1, %s1682_s28  }
  0x28   : > { %297 = sbr.rel (%p294_p12) target bundleno = 1787 (0x6fb), region = 52  ;;  %s1836_s25 = sshll.u32 (!%p294_p12), %s299_s21, 3 }
  0x29   : > { %s300_s26 = scalar_lea.sflag (!%p294_p12), [#allocation3], %s299_s21  ;;  %s303_s27 = scalar_lea.vmem (!%p294_p12), [#allocation2], %s1836_s25 }
  0x2f   : > { %1673 = dma.done.wait (%p1787_p7), %s300_s26, 128  }
  0x30   : > { %1675 = vsyncadd (%p1787_p7), %s300_s26, 4294967168  ;;  %p343_p8 = scmp.lt.s32.totalorder %s1770_s9, 1  ;;  %vm359_vm0 = vcmask 261120   ;;  %v472_v7 = vld [vmem:[%s2004_s6] sm:$0xff]  ;;  %v473_v8 = vld [vmem:[%s2004_s6 + $0x8] sm:$0xff]  ;;  %v1693_v10 = vmov 0.0|0.0  }
  0x31   : > { %v1543_v9 = vpack.c.bf16 %v473_v8, %v472_v7  ;;  %1542 = vmatprep.subr.bf16.mxu1 %v1693_v10  ;;  %1536 = vmatprep.subr.bf16.mxu0 %v1693_v10  ;;  %v474_v11 = vld [vmem:[%s2004_s6 + $0x10] sm:$0xff]  ;;  %v475_v12 = vld [vmem:[%s2004_s6 + $0x18] sm:$0xff]  ;;  %v395_v13 = vld [vmem:[%s2003_s5] sm:$0xff]  ;;  %vm1694_vm1 = vmmov 0   ;;  %v1695_v15 = vmov 0.0   ;;  %vm550_vm4 = vcmask 64512  }
  0x32   : > { %s2016_s9 = smov (!%p343_p8, %s1770_s9), 1  ;;  %v1546_v14 = vpack.c.bf16 %v475_v12, %v474_v11  ;;  %1482 = vmatprep.mubr.msk.f32.mxu1 %vm1694_vm1, %v1695_v15  ;;  %v396_v16 = vld [vmem:[%s2003_s5 + $0x8] sm:$0xff]  ;;  %v397_v17 = vld [vmem:[%s2003_s5 + $0x10] sm:$0xff]  ;;  %1471 = vmatprep.mubr.msk.f32.mxu0 %vm1694_vm1, %v1695_v15  ;;  %v398_v19 = vld [vmem:[%s2003_s5 + $0x18] sm:$0xff]  ;;  %s1696_s18 = smov 120   ;;  %vm1231_vm6 = vcmask 130048  }
  0x33   : > { %s1845_s30 = sshll.u32 %s2016_s9, 3  ;;  %1544 = vmatpush3.bf16.msra.mxu1 %v1543_v9  ;;  %v1537_v18 = vpack.c.bf16 %v396_v16, %v395_v13  ;;  %v1540_v21 = vpack.c.bf16 %v398_v19, %v397_v17  ;;  %v1413_v30 = vld [vmem:[%s2001_s3] ss:$0 sm:$0xff]  ;;  %s1697_s19 = smov 112   ;;  %vm1233_vm7 = vcmask 195584  }
  0x34   : > { %s346_s23 = scalar_lea.vmem %s1998_s0, %s1845_s30  ;;  %1545 = vmatprep.subr.bf16.mxu1 %v1693_v10  ;;  %s350_s21 = scalar_lea.vmem %s1999_s1, %s1845_s30  ;;  %v1414_v33 = vld [vmem:[%s2002_s4] ss:$0 sm:$0xff] }
  0x35   : > { %v1851_v0 = vld [vmem:[%s346_s23] sm:$0xff]  ;;  %1538 = vmatpush3.bf16.msra.mxu0 %v1537_v18  ;;  %s1699_s25 = smov 88   ;;  %s1701_s26 = smov 80  }
  0x36   : > { %v360_v1 = vsel %vm359_vm0, %v1851_v0, 0.0  ;;  %v356_v20 = vld [vmem:[%s350_s21] sm:$0xff]  ;;  %1539 = vmatprep.subr.bf16.mxu0 %v1693_v10  ;;  %s1698_s21 = smov 104   ;;  %s1702_s20 = smov 72  }
  0x37   : > { %361 = vadd.xlane.f32.xlu0 %v360_v1  ;;  %1547 = vmatpush3.bf16.msra.mxu1 %v1546_v14  ;;  %v549_v46 = vld [vmem:[%s303_s27] sm:$0xff]  ;;  %s1700_s27 = smov 96   ;;  %s1703_s15 = smov 8  }
  0x38   : > { %1485 = vmatprep.subr.mxu1 %v1695_v15  ;;  %vm628_vm5 = vcmp.eq.f32.partialorder %v549_v46, 0.0  ;;  %s1704_s17 = smov 16  }
  0x39   : > { %1541 = vmatpush3.bf16.msra.mxu0 %v1540_v21 }
  0x3a   : > { %1483 = vmatmul.mubr.msk.f32.vlgmr.msra.gmra.mrb[0].mxu1 %vm359_vm0, %v356_v20  ;;  %1495 = vmatprep.subr.mxu0 %v1695_v15 }
  0x3b   : > { %1487 = vmatprep.mubr.msk.f32.mxu1 %vm1694_vm1, %v1695_v15 }
  0xc4   : > { %v362_v2 = vpop.xlane.xlu0 %361 }
  0xc5   : > { %v364_v3 = vmul.f32 0.03125, %v362_v2 }
  0xc7   : > { %v365_v4 = vsub.f32 %v1851_v0, %v364_v3 }
  0xc9   : > { %v366_v5 = vmul.f32 %v365_v4, %v365_v4  ;;  %v386_v31 = vmul.f32 %v1413_v30, %v365_v4 }
  0xcb   : > { %v367_v6 = vsel %vm359_vm0, %v366_v5, 0.0 }
  0xcc   : > { %368 = vadd.xlane.f32.xlu0 %v367_v6 }
 0x10d   : > { %v1907_v36 = vpop.f32.mrb[0].mxu1 }
 0x10e   : > { %719 = vrot.lane.b32.xlu1 %v1907_v36, %s1696_s18  ;;  %v1484_v37 = vpop.f32.mrb[1].mxu1  ;;  %1486 = vmatpush3.xpose.msk.msra.mxu1 %vm550_vm4, %v1907_v36 }
 0x10f   : > { %886 = vrot.lane.b32.xlu0 %v1907_v36, %s1697_s19  ;;  %1490 = vmatprep.subr.mxu1 %v1695_v15 }
 0x112   : > { %1053 = vrot.lane.b32.xlu1 %v1907_v36, %s1698_s21 }
 0x159   : > { %v369_v22 = vpop.xlane.xlu0 %368 }
 0x15a   : > { %v370_v23 = vmul.f32 0.032258064, %v369_v22 }
 0x15c   : > { %1606 = vrsqrt.f32 %v370_v23  ;;  %vm373_vm2 = vcmp.eq.f32.partialorder %v370_v23, inf  ;;  %v376_v26 = vand.u32 2147483648, %v370_v23  ;;  %vm375_vm3 = vcmp.eq.f32.partialorder %v370_v23, 0.0 }
 0x166   : > { %v1607_v24 = vpop.eup %1606 }
 0x167   : > { %v372_v25 = vmul.f32 %v1607_v24, %v370_v23 }
 0x169   : > { %v374_v27 = vsel %vm373_vm2, %v370_v23, %v372_v25 }
 0x16a   : > { %v377_v28 = vsel %vm375_vm3, %v376_v26, %v374_v27 }
 0x16b   : > { %v378_v29 = vadd.f32 1e-06, %v377_v28 }
 0x16d   : > { %1608 = vrcp.f32 %v378_v29 }
 0x177   : > { %v1609_v32 = vpop.eup %1608 }
 0x178   : > { %v387_v34 = vmul.f32 %v1609_v32, %v386_v31 }
 0x17a   : > { %v394_v35 = vadd.f32 %v1414_v33, %v387_v34 }
 0x17c   : > { %1472 = vmatmul.mubr.msk.f32.vlgmr.msra.gmra.mrb[0].mxu0 %vm359_vm0, %v394_v35 }
 0x17d   : > { %1497 = vmatprep.mubr.msk.f32.mxu0 %vm1694_vm1, %v1695_v15 }
 0x180   : > { %v720_v38 = vpop.permute.xlu1 %719 }
 0x181   : > { %1496 = vmatpush3.xpose.msk.msra.mxu0 %vm550_vm4, %v720_v38  ;;  %v887_v43 = vpop.permute.xlu0 %886 }
 0x182   : > { %1505 = vmatprep.subr.mxu0 %v1695_v15 }
 0x184   : > { %v1054_v41 = vpop.permute.xlu1 %1053 }
 0x24f   : > { %v468_v39 = vpop.f32.mrb[0].mxu0 }
 0x250   : > { %717 = vrot.lane.b32.xlu1 %v468_v39, %s1696_s18  ;;  %v1473_v40 = vpop.f32.mrb[1].mxu0  ;;  %1488 = vmatmul.mubr.msk.f32.vlgmr.msra.gmra.mrb[2].mxu1 %vm550_vm4, %v468_v39  ;;  %s1705_s18 = smov 24  }
 0x251   : > { %1492 = vmatprep.mubr.msk.f32.mxu1 %vm1694_vm1, %v1695_v15 }
 0x254   : > { %884 = vrot.lane.b32.xlu1 %v468_v39, %s1697_s19 }
 0x258   : > { %1051 = vrot.lane.b32.xlu1 %v468_v39, %s1698_s21 }
 0x2c2   : > { %v718_v42 = vpop.permute.xlu1 %717 }
 0x2c3   : > { %1498 = vmatmul.mubr.msk.f32.vlgmr.msra.gmra.mrb[2].mxu0 %vm550_vm4, %v718_v42 }
 0x2c4   : > { %1506 = vmatpush3.xpose.msk.msra.mxu0 %vm550_vm4, %v887_v43  ;;  %1507 = vmatprep.mubr.msk.f32.mxu0 %vm1694_vm1, %v1695_v15 }
 0x2c5   : > { %1515 = vmatprep.subr.mxu0 %v1695_v15 }
 0x2c6   : > { %v885_v44 = vpop.permute.xlu1 %884 }
 0x2c7   : > { %1508 = vmatmul.mubr.msk.f32.vlgmr.msra.gmra.mrb[4].mxu0 %vm550_vm4, %v885_v44  ;;  %v1235_v44 = vld [vmem:[%s2005_s7] sm:$0xff] }
 0x2c8   : > { %1516 = vmatpush3.xpose.msk.msra.mxu0 %vm550_vm4, %v1054_v41  ;;  %1517 = vmatprep.mubr.msk.f32.mxu0 %vm1694_vm1, %v1695_v15 }
 0x2c9   : > { %1548 = vmatprep.subr.bf16.mxu0 %v1693_v10 }
 0x2ca   : > { %v1052_v45 = vpop.permute.xlu1 %1051 }
 0x2cb   : > { %1518 = vmatmul.mubr.msk.f32.vlgmr.msra.gmra.mrb[6].mxu0 %vm550_vm4, %v1052_v45  ;;  %v1236_v45 = vld [vmem:[%s2005_s7 + $0x8] sm:$0xff] }
 0x2cc   : > { %1533 = vmatprep.mubr.msk.f32.mxu0 %vm1694_vm1, %v1695_v15  ;;  %v1549_v46 = vpack.c.bf16 %v1236_v45, %v1235_v44 }
 0x2ce   : > { %1550 = vmatpush3.bf16.msra.mxu0 %v1549_v46 }
 0x2cf   : > { %1551 = vmatprep.subr.bf16.mxu0 %v1693_v10 }
 0x323   : > { %v623_v47 = vpop.f32.mrb[2].mxu1 }
 0x324   : > { %v627_v48 = vmul.f32 0.35355338, %v623_v47  ;;  %v1489_v49 = vpop.f32.mrb[3].mxu1  ;;  %v1238_v47 = vld [vmem:[%s2005_s7 + $0x18] sm:$0xff] }
 0x326   : > { %v629_v50 = vsel %vm628_vm5, -1e+09, %v627_v48 }
 0x327   : > { %v630_v51 = vsel %vm550_vm4, %v629_v50, -inf }
 0x328   : > { %631 = vmax.xlane.f32.xlu1 %v630_v51 }
 0x396   : > { %v791_v52 = vpop.f32.mrb[2].mxu0 }
 0x397   : > { %v795_v53 = vmul.f32 0.35355338, %v791_v52  ;;  %v1499_v54 = vpop.f32.mrb[3].mxu0 }
 0x399   : > { %v796_v55 = vsel %vm628_vm5, -1e+09, %v795_v53 }
 0x39a   : > { %v958_v56 = vpop.f32.mrb[4].mxu0  ;;  %v797_v57 = vsel %vm550_vm4, %v796_v55, -inf }
 0x39b   : > { %v962_v58 = vmul.f32 0.35355338, %v958_v56  ;;  %798 = vmax.xlane.f32.xlu0 %v797_v57  ;;  %v1509_v59 = vpop.f32.mrb[5].mxu0 }
 0x39d   : > { %v963_v60 = vsel %vm628_vm5, -1e+09, %v962_v58 }
 0x39e   : > { %v1125_v61 = vpop.f32.mrb[6].mxu0  ;;  %v964_v62 = vsel %vm550_vm4, %v963_v60, -inf }
 0x39f   : > { %v1129_v63 = vmul.f32 0.35355338, %v1125_v61  ;;  %965 = vmax.xlane.f32.xlu1 %v964_v62  ;;  %v1519_v1 = vpop.f32.mrb[7].mxu0 }
 0x3a1   : > { %v1130_v2 = vsel %vm628_vm5, -1e+09, %v1129_v63 }
 0x3a2   : > { %v1131_v3 = vsel %vm550_vm4, %v1130_v2, -inf }
 0x3a3   : > { %1132 = vmax.xlane.f32.xlu1 %v1131_v3 }
 0x3b4   : > { %808 = vrot.lane.b32.xlu1 %v1907_v36, %s1699_s25  ;;  %s354_s25 = scalar_lea.vmem %s2006_s8, %s1845_s30 }
 0x3b5   : > { %v632_v4 = vpop.xlane.xlu1 %631 }
 0x3b6   : > { %v633_v5 = vsub.f32 %v629_v50, %v632_v4 }
 0x3b8   : > { %v634_v6 = vmul.f32 1.442695, %v633_v5 }
 0x3ba   : > { %1610 = vpow2.f32 %v634_v6 }
 0x3c4   : > { %v1611_v7 = vpop.eup %1610 }
 0x3c5   : > { %v636_v8 = vsel %vm550_vm4, %v1611_v7, 0.0 }
 0x3c6   : > { %637 = vadd.xlane.f32.xlu0 %v636_v8 }
 0x3dc   : > { %641 = vrot.lane.b32.xlu0 %v1907_v36, %s1700_s27 }
 0x428   : > { %v799_v9 = vpop.xlane.xlu0 %798 }
 0x429   : > { %v800_v11 = vsub.f32 %v796_v55, %v799_v9 }
 0x42b   : > { %v801_v12 = vmul.f32 1.442695, %v800_v11 }
 0x42c   : > { %v966_v13 = vpop.xlane.xlu1 %965 }
 0x42d   : > { %1612 = vpow2.f32 %v801_v12  ;;  %v967_v14 = vsub.f32 %v963_v60, %v966_v13 }
 0x42f   : > { %v968_v16 = vmul.f32 1.442695, %v967_v14 }
 0x430   : > { %v1133_v17 = vpop.xlane.xlu1 %1132 }
 0x431   : > { %1614 = vpow2.f32 %v968_v16  ;;  %v1134_v18 = vsub.f32 %v1130_v2, %v1133_v17 }
 0x433   : > { %v1135_v19 = vmul.f32 1.442695, %v1134_v18 }
 0x434   : > { %v809_v30 = vpop.permute.xlu1 %808 }
 0x435   : > { %1616 = vpow2.f32 %v1135_v19 }
 0x437   : > { %v1613_v20 = vpop.eup %1612 }
 0x438   : > { %v803_v21 = vsel %vm550_vm4, %v1613_v20, 0.0 }
 0x439   : > { %804 = vadd.xlane.f32.xlu1 %v803_v21 }
 0x43b   : > { %v1615_v22 = vpop.eup %1614 }
 0x43c   : > { %v970_v23 = vsel %vm550_vm4, %v1615_v22, 0.0 }
 0x43d   : > { %971 = vadd.xlane.f32.xlu0 %v970_v23 }
 0x43f   : > { %v1617_v24 = vpop.eup %1616 }
 0x440   : > { %v1137_v25 = vsel %vm550_vm4, %v1617_v24, 0.0 }
 0x441   : > { %1138 = vadd.xlane.f32.xlu1 %v1137_v25 }
 0x452   : > { %975 = vrot.lane.b32.xlu1 %v1907_v36, %s1701_s26 }
 0x453   : > { %1142 = vrot.lane.b32.xlu0 %v1907_v36, %s1702_s20  ;;  %v638_v26 = vpop.xlane.xlu0 %637 }
 0x454   : > { %1618 = vrcp.f32 %v638_v26 }
 0x457   : > { %v642_v27 = vpop.permute.xlu0 %641 }
 0x458   : > { %1491 = vmatpush3.msra.mxu1 %v642_v27 }
 0x459   : > { %1500 = vmatprep.subr.mxu1 %v1695_v15 }
 0x45e   : > { %v1619_v28 = vpop.eup %1618 }
 0x45f   : > { %v640_v29 = vmul.f32 %v1619_v28, %v1611_v7 }
 0x461   : > { %1493 = vmatmul.mubr.msk.f32.vlgmr.msra.gmra.mrb[4].mxu1 %vm550_vm4, %v640_v29 }
 0x462   : > { %1501 = vmatpush3.msra.mxu1 %v809_v30  ;;  %1502 = vmatprep.mubr.msk.f32.mxu1 %vm1694_vm1, %v1695_v15 }
 0x463   : > { %1510 = vmatprep.subr.mxu1 %v1695_v15 }
 0x4c6   : > { %v805_v31 = vpop.xlane.xlu1 %804 }
 0x4c7   : > { %1620 = vrcp.f32 %v805_v31 }
 0x4ca   : > { %v972_v32 = vpop.xlane.xlu0 %971 }
 0x4cb   : > { %1622 = vrcp.f32 %v972_v32 }
 0x4ce   : > { %v1139_v33 = vpop.xlane.xlu1 %1138  ;;  %v1143_v39 = vpop.permute.xlu0 %1142 }
 0x4cf   : > { %1624 = vrcp.f32 %v1139_v33 }
 0x4d1   : > { %v1621_v34 = vpop.eup %1620 }
 0x4d2   : > { %v807_v35 = vmul.f32 %v1621_v34, %v1613_v20  ;;  %v976_v36 = vpop.permute.xlu1 %975 }
 0x4d4   : > { %1503 = vmatmul.mubr.msk.f32.vlgmr.msra.gmra.mrb[6].mxu1 %vm550_vm4, %v807_v35 }
 0x4d5   : > { %v1623_v37 = vpop.eup %1622  ;;  %1511 = vmatpush3.msra.mxu1 %v976_v36  ;;  %1512 = vmatprep.mubr.msk.f32.mxu1 %vm1694_vm1, %v1695_v15 }
 0x4d6   : > { %v974_v38 = vmul.f32 %v1623_v37, %v1615_v22  ;;  %1520 = vmatprep.subr.mxu1 %v1695_v15 }
 0x4d8   : > { %1513 = vmatmul.mubr.msk.f32.vlgmr.msra.gmra.mrb[8].mxu1 %vm550_vm4, %v974_v38 }
 0x4d9   : > { %v1625_v40 = vpop.eup %1624  ;;  %1521 = vmatpush3.msra.mxu1 %v1143_v39  ;;  %1522 = vmatprep.mubr.msk.f32.mxu1 %vm1694_vm1, %v1695_v15  ;;  %v1237_v15 = vld [vmem:[%s2005_s7 + $0x10] sm:$0xff] }
 0x4da   : > { %v1141_v41 = vmul.f32 %v1625_v40, %v1617_v24  ;;  %v1552_v48 = vpack.c.bf16 %v1238_v47, %v1237_v15 }
 0x4dc   : > { %1523 = vmatmul.mubr.msk.f32.vlgmr.msra.gmra.mrb[10].mxu1 %vm550_vm4, %v1141_v41  ;;  %1553 = vmatpush3.bf16.msra.mxu0 %v1552_v48 }
 0x534   : > { %v713_v42 = vpop.f32.mrb[4].mxu1 }
 0x535   : > { %v1494_v43 = vpop.f32.mrb[5].mxu1 }
 0x5a7   : > { %v880_v49 = vpop.f32.mrb[6].mxu1 }
 0x5a8   : > { %1219 = vrot.lane.b32.xlu1 %v880_v49, %s1703_s15  ;;  %v1504_v50 = vpop.f32.mrb[7].mxu1 }
 0x5ab   : > { %v1047_v51 = vpop.f32.mrb[8].mxu1 }
 0x5ac   : > { %1223 = vrot.lane.b32.xlu0 %v1047_v51, %s1704_s17  ;;  %v1514_v52 = vpop.f32.mrb[9].mxu1 }
 0x5af   : > { %v1214_v10 = vpop.f32.mrb[10].mxu1 }
 0x5b0   : > { %1227 = vrot.lane.b32.xlu1 %v1214_v10, %s1705_s18  ;;  %v1524_v53 = vpop.f32.mrb[11].mxu1 }
 0x61a   : > { %v1220_v54 = vpop.permute.xlu1 %1219 }
 0x61b   : > { %v1230_v56 = vsel %vm550_vm4, %v713_v42, %v1220_v54 }
 0x61e   : > { %v1224_v55 = vpop.permute.xlu0 %1223 }
 0x61f   : > { %v1232_v57 = vsel %vm1231_vm6, %v1230_v56, %v1224_v55 }
 0x622   : > { %v1228_v58 = vpop.permute.xlu1 %1227 }
 0x623   : > { %v1234_v59 = vsel %vm1233_vm7, %v1232_v57, %v1228_v58 }
 0x624   : > { %1534 = vmatmul.mubr.msk.f32.vlgmr.msra.gmra.mrb[8].mxu0 %vm359_vm0, %v1234_v59 }
 0x6f7   : > { %v1308_v60 = vpop.f32.mrb[8].mxu0 }
 0x6f8   : > { %v1312_v61 = vadd.f32 %v1308_v60, %v1851_v0  ;;  %v1535_v62 = vpop.f32.mrb[9].mxu0 }
 0x6fa   : > { %1313 = vst.msk [vmem:[%s354_s25] sm:$0xff] %vm359_vm0, %v1312_v61 }
 0x6fb PF: > { %p18_p7 = scmp.ge.s32.totalorder %s1773_s10, 4   ;;  %s2011_s27 = smov %s1682_s28 }
 0x6fc   : > { %s2012_s28 = smov %s1686_s29  ;;  %s2013_s29 = smov %s1783_s13 }
 0x6fd   : > { %s2014_s30 = smov %s1773_s10  ;;  %20 = sbr.rel (!%p18_p7) target bundleno = 3 (0x3), region = 98 }
 0x704   :  { %1333 = vsyncpa [#allocation3], 1 }
 0x705   :  { %1335 = vsyncpa [#allocation3 + $0x1], 1 }

// kernel: decoder_block.3
= control target key start
LH: loop header
LB: loop body
LE: loop exit
PB: predicated region body
PF: predicated region fallthrough
CT: control target
= control target key end

     0   :  { %11 = vsyncpa [#allocation3], 0  ;;  %s1916_s0 = inlined_call_operand.hbm [shape: f32[2,8,32], index: 0, kind: input, shape index: {}]   ;;  %s1917_s1 = inlined_call_operand.hbm [shape: f32[2,8,8], index: 1, kind: input, shape index: {}]   ;;  %s1918_s2 = inlined_call_operand.vmem [shape: f32[1,32], index: 2, kind: input, shape index: {}]   ;;  %s1919_s3 = inlined_call_operand.vmem [shape: f32[1,32], index: 3, kind: input, shape index: {}]   ;;  %s1920_s4 = inlined_call_operand.vmem [shape: f32[32,96], index: 4, kind: input, shape index: {}]   ;;  %s1921_s5 = inlined_call_operand.vmem [shape: f32[32,32], index: 5, kind: input, shape index: {}]   ;;  %s1922_s6 = inlined_call_operand.vmem [shape: f32[2,8,32], index: 6, kind: output, shape index: {}]  }
   0x1   :  { %13 = vsyncpa [#allocation3 + $0x1], 0 }
   0x2   :  { %14 = vsyncpa [#allocation5], 0 }
   0x3   :  { %16 = vsyncpa [#allocation5 + $0x1], 0  ;;  %s1638_s21 = smov 0   ;;  %s1640_s22 = smov 0  }
   0x4   :  { %s1642_s23 = smov 0   ;;  %s1644_s24 = smov 0  }
   0x5 LB: > { %s1657_s25 = sadd.s32 4294967295, %s1582_s24   ;;  %s1660_s26 = sadd.s32 1, %s1582_s24   ;;  %s1582_s24 = sphi %s1644_s24, %s1934_s24   ;;  %s1578_s23 = sphi %s1642_s23, %s1933_s23   ;;  %s1574_s22 = sphi %s1640_s22, %s1932_s22   ;;  %s1570_s21 = sphi %s1638_s21, %s1931_s21  }
   0x6   : > { %s26_s27 = ssub.s32 %s1582_s24, %s1660_s26  ;;  %s29_s28 = sadd.s32 1, %s1578_s23 }
   0x7   : > { %p27_p0 = scmp.eq.s32.totalorder %s26_s27, 0  ;;  %p36_p1 = scmp.ne.s32.totalorder %s1578_s23, %s1574_s22 }
   0x8   : > { %p37_p2 = scmp.eq.s32.totalorder %s1582_s24, 0  ;;  %p42_p3 = scmp.ne.s32.totalorder %s1574_s22, %s1570_s21 }
   0x9   : > { %s1670_s29 = scalar_select %p27_p0, %s1578_s23, %s29_s28  }
   0xa   : > { %p38_p4 = por %p37_p2, %p36_p1  ;;  %p43_p5 = scmp.eq.s32.totalorder %s1657_s25, 0 }
   0xb   : > { %p1414_p6 = scmp.lt.s32.totalorder %s1582_s24, 2  ;;  %s1679_s7 = sand.u32 1, %s1578_s23  }
   0xc   : > { %p1674_p7 = por %p43_p5, %p42_p3  ;;  %s1277_s8 = sshll.u32 %s1679_s7, 3 }
   0xd   : > { %s1278_s9 = sshll.u32 %s1582_s24, 7  ;;  %s218_s13 = scalar_lea.vmem [#allocation2], %s1277_s8 }
   0xe   : > { %s1924_s30 = scalar_select %p1674_p7, 1, 0 }
   0xf   : > { %s1688_s12 = scalar_lea.hbm %s1916_s0, %s1278_s9  ;;  %s225_s14 = sshll.u32 %s218_s13, 4  ;;  %s1692_s14 = int_to_ptr.vmem [resolvable:$true] %s225_s14 }
  0x10   : > { %p1694_p8 = pnand %p1414_p6, %p38_p4  ;;  %s215_s16 = scalar_lea.sflag [#allocation3], %s1679_s7 }
  0x11   : > { %s1484_s17 = scalar_lea.hbm %s1688_s12, 128  ;;  %s1489_s20 = scalar_lea.hbm %s1916_s0, 256 }
  0x12   : > { %p1485_p11 = scmp.ne.s32.totalorder %s1688_s12, %s1484_s17  ;;  %p1486_p12 = pneg %p1694_p8 }
  0x13   : > { %p1490_p1 = scmp.lt.u32.totalorder %s1688_s12, %s1916_s0  ;;  %p1491_p2 = scmp.lt.u32.totalorder %s1489_s20, %s1484_s17 }
  0x14   : > { %p1487_p13 = pnand %p1486_p12, %p1485_p11  ;;  %p1493_p4 = scmp.lt.u32.totalorder %s1484_s17, %s1688_s12 }
  0x15   : > { %p1492_p3 = por %p1491_p2, %p1490_p1 }
  0x16   : > { %p1488_p0 = pneg %p1487_p13 }
  0x17   : > { %p1494_p5 = por %p1493_p4, %p1492_p3 }
  0x19   : > { %p1495_p6 = pnand %p1494_p5, %p1488_p0 }
  0x1b   : > { %1498 = shalt.err (!%p1495_p6)
}
  0x1c   : > { %s1499_s28 = scalar_lea.vmem %s1692_s14, 128  ;;  %s1584_s10 = smov [#allocation2]  }
  0x1d   : > { %p1500_p11 = scmp.ne.s32.totalorder %s1692_s14, %s1499_s28  ;;  %s1504_s11 = sshll.u32 %s1584_s10, 4  ;;  %s1505_s11 = int_to_ptr.vmem [resolvable:$false] %s1504_s11 }
  0x1e   : > { %s1506_s13 = scalar_lea.vmem %s1505_s11, 256  ;;  %p1507_p10 = scmp.lt.s32.totalorder %s1692_s14, %s1505_s11 }
  0x1f   : > { %p1502_p13 = pnand %p1500_p11, %p1486_p12  ;;  %p1508_p1 = scmp.lt.s32.totalorder %s1506_s13, %s1499_s28 }
  0x21   : > { %p1503_p9 = pneg %p1502_p13  ;;  %p1509_p2 = por %p1508_p1, %p1507_p10 }
  0x23   : > { %p1510_p3 = pnand %p1509_p2, %p1503_p9 }
  0x25   : > { %1513 = shalt.err (!%p1510_p3)
}
  0x26   : > { %1410 = dma.hbm_to_vmem [thread:$0]  (!%p1694_p8), %s1688_s12, 128, %s1692_s14, %s215_s16  }
  0x27   : > { %p1926_p0 = scmp.lt.s32.totalorder %s1582_s24, 3  ;;  %p1927_p4 = scmp.ge.s32.totalorder %s1582_s24, 1 }
  0x28   : > { %s1739_s20 = scalar_lea.hbm %s1917_s1, %s1278_s9  ;;  %s236_s21 = scalar_lea.vmem [#allocation4], %s1277_s8 }
  0x29   : > { %p1730_p5 = pnand %p1927_p4, %p1926_p0  ;;  %s243_s27 = sshll.u32 %s236_s21, 4  ;;  %s244_s27 = int_to_ptr.vmem [resolvable:$true] %s243_s27 }
  0x2a   : > { %s233_s12 = scalar_lea.sflag [#allocation5], %s1679_s7  ;;  %s1514_s14 = scalar_lea.hbm %s1739_s20, 128 }
  0x2b   : > { %s1928_s17 = scalar_select %p1730_p5, 1, 0 }
  0x2c   : > { %p1515_p9 = scmp.ne.s32.totalorder %s1739_s20, %s1514_s14  ;;  %s1519_s9 = scalar_lea.hbm %s1917_s1, 256 }
  0x2d   : > { %p1520_p11 = scmp.lt.u32.totalorder %s1739_s20, %s1917_s1  ;;  %p1521_p13 = scmp.lt.u32.totalorder %s1519_s9, %s1514_s14 }
  0x2e   : > { %p1517_p10 = pnand %p1515_p9, %p1486_p12  ;;  %p1523_p2 = scmp.lt.u32.totalorder %s1514_s14, %s1739_s20 }
  0x2f   : > { %p1522_p1 = por %p1521_p13, %p1520_p11 }
  0x30   : > { %p1518_p6 = pneg %p1517_p10 }
  0x31   : > { %p1524_p3 = por %p1523_p2, %p1522_p1 }
  0x33   : > { %p1525_p0 = pnand %p1524_p3, %p1518_p6 }
  0x35   : > { %1528 = shalt.err (!%p1525_p0)
}
  0x36   : > { %s1529_s7 = scalar_lea.vmem %s244_s27, 128  ;;  %s1585_s8 = smov [#allocation4]  }
  0x37   : > { %p1530_p4 = scmp.ne.s32.totalorder %s244_s27, %s1529_s7  ;;  %s1534_s11 = sshll.u32 %s1585_s8, 4  ;;  %s1535_s11 = int_to_ptr.vmem [resolvable:$false] %s1534_s11 }
  0x38   : > { %s1536_s13 = scalar_lea.vmem %s1535_s11, 256  ;;  %p1537_p7 = scmp.lt.s32.totalorder %s244_s27, %s1535_s11 }
  0x39   : > { %p1532_p9 = pnand %p1530_p4, %p1486_p12  ;;  %p1538_p5 = scmp.lt.s32.totalorder %s1536_s13, %s1529_s7 }
  0x3b   : > { %p1533_p10 = pneg %p1532_p9  ;;  %p1539_p11 = por %p1538_p5, %p1537_p7 }
  0x3d   : > { %p1540_p13 = pnand %p1539_p11, %p1533_p10 }
  0x3f   : > { %1543 = shalt.err (!%p1540_p13)
}
  0x40   : > { %1413 = dma.hbm_to_vmem [thread:$0]  (!%p1694_p8), %s1739_s20, 128, %s244_s27, %s233_s12  }
  0x41   : > { %p1929_p6 = scmp.ne.s32.totalorder %s1928_s17, 0 }
  0x42   : > { %s254_s18 = sand.u32 (!%p1929_p6), 1, %s1574_s22   ;;  %p1930_p12 = scmp.ne.s32.totalorder (!%p1929_p6), %s1924_s30, 0 }
  0x43   : > { %252 = sbr.rel (%p1929_p6) target bundleno = 2347 (0x92b), region = 44  ;;  %s1282_s19 = sshll.u32 (!%p1929_p6), %s254_s18, 3 }
  0x44   : > { %s255_s21 = scalar_lea.sflag (!%p1929_p6), [#allocation3], %s254_s18  ;;  %s258_s14 = scalar_lea.vmem (!%p1929_p6), [#allocation2], %s1282_s19 }
  0x4a   : > { %1561 = dma.done.wait (%p1930_p12), %s255_s21, 128  }
  0x4b   : > { %1563 = vsyncadd (%p1930_p12), %s255_s21, 4294967168  ;;  %s264_s24 = scalar_lea.sflag [#allocation5], %s254_s18  ;;  %s1770_s16 = scalar_lea.vmem [#allocation4], %s1282_s19 }
  0x4c   : > { %1565 = dma.done.wait (%p1930_p12), %s264_s24, 128  }
  0x4d   : > { %1567 = vsyncadd (%p1930_p12), %s264_s24, 4294967168  ;;  %vm307_vm0 = vcmask 261120   ;;  %v1776_v0 = vld [vmem:[%s258_s14] sm:$0xff]  ;;  %v345_v9 = vld [vmem:[%s1920_s4 + $0x10] sm:$0xff]  ;;  %v1586_v10 = vmov 0.0|0.0   ;;  %vm1587_vm1 = vmmov 0  }
  0x4e   : > { %v308_v1 = vsel %vm307_vm0, %v1776_v0, 0.0  ;;  %v343_v7 = vld [vmem:[%s1920_s4] sm:$0xff]  ;;  %v344_v8 = vld [vmem:[%s1920_s4 + $0x8] sm:$0xff]  ;;  %1391 = vmatprep.subr.bf16.mxu0 %v1586_v10  ;;  %v346_v12 = vld [vmem:[%s1920_s4 + $0x18] sm:$0xff]  ;;  %v1588_v13 = vmov 0.0   ;;  %s1589_s13 = smov 64  }
  0x4f   : > { %309 = vadd.xlane.f32.xlu0 %v308_v1  ;;  %v1392_v11 = vpack.c.bf16 %v344_v8, %v343_v7  ;;  %1337 = vmatprep.mubr.msk.f32.mxu0 %vm1587_vm1, %v1588_v13  ;;  %v1395_v14 = vpack.c.bf16 %v346_v12, %v345_v9  ;;  %v1285_v23 = vld [vmem:[%s1918_s2] ss:$0 sm:$0xff]  ;;  %s1590_s18 = smov 96   ;;  %s1591_s19 = smov 88   ;;  %vm424_vm4 = vcmask 64512   ;;  %v1825_v33 = vld [vmem:[%s1770_s16] sm:$0xff] }
  0x50   : > { %1340 = vmatprep.subr.mxu1 %v1588_v13  ;;  %1342 = vmatprep.mubr.msk.f32.mxu1 %vm1587_vm1, %v1588_v13  ;;  %v1286_v26 = vld [vmem:[%s1919_s3] ss:$0 sm:$0xff]  ;;  %s1592_s21 = smov 120   ;;  %vm500_vm5 = vcmp.eq.f32.partialorder %v1825_v33, 0.0  ;;  %s1593_s14 = smov 80   ;;  %vm1103_vm6 = vcmask 130048  }
  0x51   : > { %1393 = vmatpush3.bf16.msra.mxu0 %v1392_v11  ;;  %s1594_s24 = smov 112   ;;  %s1595_s16 = smov 72   ;;  %vm1105_vm7 = vcmask 195584  }
  0x52   : > { %1394 = vmatprep.subr.bf16.mxu0 %v1586_v10  ;;  %s1596_s15 = smov 104   ;;  %s1597_s17 = smov 48  }
  0x53   : > { %s1598_s30 = smov 56   ;;  %s1599_s20 = smov 40  }
  0x54   : > { %p300_p7 = scmp.lt.s32.totalorder %s1657_s25, 1 }
  0x55   : > { %1396 = vmatpush3.bf16.msra.mxu0 %v1395_v14 }
  0x56   : > { %1360 = vmatprep.subr.mxu0 %v1588_v13  ;;  %s1936_s25 = smov (!%p300_p7, %s1657_s25), 1 }
  0xdc   : > { %v310_v2 = vpop.xlane.xlu0 %309 }
  0xdd   : > { %v312_v3 = vmul.f32 0.03125, %v310_v2 }
  0xdf   : > { %v313_v4 = vsub.f32 %v1776_v0, %v312_v3 }
  0xe1   : > { %v314_v5 = vmul.f32 %v313_v4, %v313_v4  ;;  %v334_v24 = vmul.f32 %v1285_v23, %v313_v4 }
  0xe3   : > { %v315_v6 = vsel %vm307_vm0, %v314_v5, 0.0 }
  0xe4   : > { %316 = vadd.xlane.f32.xlu0 %v315_v6 }
 0x171   : > { %v317_v15 = vpop.xlane.xlu0 %316 }
 0x172   : > { %v318_v16 = vmul.f32 0.032258064, %v317_v15 }
 0x174   : > { %1464 = vrsqrt.f32 %v318_v16  ;;  %vm321_vm2 = vcmp.eq.f32.partialorder %v318_v16, inf  ;;  %v324_v19 = vand.u32 2147483648, %v318_v16  ;;  %vm323_vm3 = vcmp.eq.f32.partialorder %v318_v16, 0.0 }
 0x17e   : > { %v1465_v17 = vpop.eup %1464 }
 0x17f   : > { %v320_v18 = vmul.f32 %v1465_v17, %v318_v16 }
 0x181   : > { %v322_v20 = vsel %vm321_vm2, %v318_v16, %v320_v18 }
 0x182   : > { %v325_v21 = vsel %vm323_vm3, %v324_v19, %v322_v20 }
 0x183   : > { %v326_v22 = vadd.f32 1e-06, %v325_v21 }
 0x185   : > { %1466 = vrcp.f32 %v326_v22 }
 0x18f   : > { %v1467_v25 = vpop.eup %1466 }
 0x190   : > { %v335_v27 = vmul.f32 %v1467_v25, %v334_v24 }
 0x192   : > { %v342_v28 = vadd.f32 %v1286_v26, %v335_v27 }
 0x194   : > { %1338 = vmatmul.mubr.msk.f32.vlgmr.msra.gmra.mrb[0].mxu0 %vm307_vm0, %v342_v28 }
 0x195   : > { %1362 = vmatprep.mubr.msk.f32.mxu0 %vm1587_vm1, %v1588_v13 }
 0x267   : > { %v1811_v29 = vpop.f32.mrb[0].mxu0 }
 0x268   : > { %513 = vrot.lane.b32.xlu0 %v1811_v29, %s1589_s13  ;;  %422 = vrot.lane.b32.xlu1 %v1811_v29, %s1590_s18  ;;  %v1339_v30 = vpop.f32.mrb[1].mxu0  ;;  %s1600_s13 = smov 8   ;;  %s1601_s18 = smov 16  }
 0x26c   : > { %591 = vrot.lane.b32.xlu0 %v1811_v29, %s1591_s19  ;;  %s1602_s19 = smov 24  }
 0x270   : > { %589 = vrot.lane.b32.xlu0 %v1811_v29, %s1592_s21  ;;  %s1284_s21 = sshll.u32 %s1936_s25, 3 }
 0x2da   : > { %v423_v31 = vpop.permute.xlu1 %422  ;;  %v514_v32 = vpop.permute.xlu0 %513 }
 0x2db   : > { %1341 = vmatpush3.xpose.msk.msra.mxu1 %vm424_vm4, %v423_v31 }
 0x2dc   : > { %1345 = vmatprep.subr.mxu1 %v1588_v13 }
 0x2de   : > { %1343 = vmatmul.mubr.msk.f32.vlgmr.msra.gmra.mrb[0].mxu1 %vm424_vm4, %v1811_v29  ;;  %v592_v45 = vpop.permute.xlu0 %591 }
 0x2df   : > { %1346 = vmatpush3.msra.mxu1 %v514_v32  ;;  %1347 = vmatprep.mubr.msk.f32.mxu1 %vm1587_vm1, %v1588_v13 }
 0x2e0   : > { %1350 = vmatprep.subr.mxu1 %v1588_v13 }
 0x2e2   : > { %v590_v46 = vpop.permute.xlu0 %589 }
 0x3b1   : > { %v495_v34 = vpop.f32.mrb[0].mxu1 }
 0x3b2   : > { %v499_v35 = vmul.f32 0.35355338, %v495_v34  ;;  %v1344_v36 = vpop.f32.mrb[1].mxu1 }
 0x3b3   : > { %v1107_v36 = vld [vmem:[%s1921_s5] sm:$0xff] }
 0x3b4   : > { %v501_v37 = vsel %vm500_vm5, -1e+09, %v499_v35 }
 0x3b5   : > { %v502_v38 = vsel %vm424_vm4, %v501_v37, -inf }
 0x3b6   : > { %503 = vmax.xlane.f32.xlu1 %v502_v38 }
 0x3c7   : > { %758 = vrot.lane.b32.xlu1 %v1811_v29, %s1593_s14 }
 0x443   : > { %v504_v39 = vpop.xlane.xlu1 %503 }
 0x444   : > { %v505_v40 = vsub.f32 %v501_v37, %v504_v39  ;;  %v1108_v37 = vld [vmem:[%s1921_s5 + $0x8] sm:$0xff]  ;;  %v1109_v39 = vld [vmem:[%s1921_s5 + $0x10] sm:$0xff] }
 0x445   : > { %v1398_v38 = vpack.c.bf16 %v1108_v37, %v1107_v36 }
 0x446   : > { %v506_v41 = vmul.f32 1.442695, %v505_v40 }
 0x447   : > { %v759_v42 = vpop.permute.xlu1 %758 }
 0x448   : > { %1468 = vpow2.f32 %v506_v41  ;;  %1361 = vmatpush3.xpose.msk.msra.mxu0 %vm424_vm4, %v759_v42 }
 0x449   : > { %1370 = vmatprep.subr.mxu0 %v1588_v13 }
 0x452   : > { %v1469_v43 = vpop.eup %1468 }
 0x453   : > { %v508_v44 = vsel %vm424_vm4, %v1469_v43, 0.0 }
 0x454   : > { %509 = vadd.xlane.f32.xlu0 %v508_v44 }
 0x46a   : > { %756 = vrot.lane.b32.xlu0 %v1811_v29, %s1594_s24 }
 0x46e   : > { %925 = vrot.lane.b32.xlu0 %v1811_v29, %s1595_s16  ;;  %s303_s16 = scalar_lea.vmem %s1922_s6, %s1284_s21 }
 0x472   : > { %923 = vrot.lane.b32.xlu0 %v1811_v29, %s1596_s15 }
 0x4e1   : > { %v510_v47 = vpop.xlane.xlu0 %509 }
 0x4e2   : > { %1470 = vrcp.f32 %v510_v47 }
 0x4e5   : > { %v757_v48 = vpop.permute.xlu0 %756 }
 0x4e6   : > { %1363 = vmatmul.mubr.msk.f32.vlgmr.msra.gmra.mrb[2].mxu0 %vm424_vm4, %v757_v48 }
 0x4e7   : > { %1372 = vmatprep.mubr.msk.f32.mxu0 %vm1587_vm1, %v1588_v13 }
 0x4e9   : > { %v926_v49 = vpop.permute.xlu0 %925 }
 0x4ea   : > { %1371 = vmatpush3.xpose.msk.msra.mxu0 %vm424_vm4, %v926_v49 }
 0x4eb   : > { %1397 = vmatprep.subr.bf16.mxu0 %v1586_v10 }
 0x4ec   : > { %v1471_v50 = vpop.eup %1470 }
 0x4ed   : > { %v512_v51 = vmul.f32 %v1471_v50, %v1469_v43  ;;  %v924_v52 = vpop.permute.xlu0 %923 }
 0x4ee   : > { %1373 = vmatmul.mubr.msk.f32.vlgmr.msra.gmra.mrb[4].mxu0 %vm424_vm4, %v924_v52 }
 0x4ef   : > { %1348 = vmatmul.mubr.msk.f32.vlgmr.msra.gmra.mrb[2].mxu1 %vm424_vm4, %v512_v51  ;;  %1388 = vmatprep.mubr.msk.f32.mxu0 %vm1587_vm1, %v1588_v13 }
 0x4f0   : > { %1351 = vmatpush3.xpose.msk.msra.mxu1 %vm424_vm4, %v592_v45  ;;  %1352 = vmatprep.mubr.msk.f32.mxu1 %vm1587_vm1, %v1588_v13 }
 0x4f1   : > { %1355 = vmatprep.subr.mxu1 %v1588_v13  ;;  %1399 = vmatpush3.bf16.msra.mxu0 %v1398_v38 }
 0x4f2   : > { %1400 = vmatprep.subr.bf16.mxu0 %v1586_v10 }
 0x4f3   : > { %1353 = vmatmul.mubr.msk.f32.vlgmr.msra.gmra.mrb[4].mxu1 %vm424_vm4, %v590_v46 }
 0x4f4   : > { %1357 = vmatprep.mubr.msk.f32.mxu1 %vm1587_vm1, %v1588_v13 }
 0x5b9   : > { %v830_v53 = vpop.f32.mrb[2].mxu0 }
 0x5ba   : > { %v834_v54 = vmul.f32 0.35355338, %v830_v53  ;;  %v1364_v55 = vpop.f32.mrb[3].mxu0 }
 0x5bc   : > { %v835_v56 = vsel %vm500_vm5, -1e+09, %v834_v54 }
 0x5bd   : > { %v836_v57 = vsel %vm424_vm4, %v835_v56, -inf }
 0x5be   : > { %837 = vmax.xlane.f32.xlu1 %v836_v57 }
 0x5c1   : > { %v997_v58 = vpop.f32.mrb[4].mxu0 }
 0x5c2   : > { %v1857_v59 = vpop.f32.mrb[2].mxu1  ;;  %v1374_v60 = vpop.f32.mrb[5].mxu0  ;;  %v1001_v63 = vmul.f32 0.35355338, %v997_v58 }
 0x5c3   : > { %v1349_v61 = vpop.f32.mrb[3].mxu1 }
 0x5c4   : > { %v1002_v5 = vsel %vm500_vm5, -1e+09, %v1001_v63 }
 0x5c5   : > { %v1003_v6 = vsel %vm424_vm4, %v1002_v5, -inf }
 0x5c6   : > { %v663_v62 = vpop.f32.mrb[4].mxu1 }
 0x5c7   : > { %v667_v1 = vmul.f32 0.35355338, %v663_v62  ;;  %v1354_v2 = vpop.f32.mrb[5].mxu1 }
 0x5c9   : > { %v668_v3 = vsel %vm500_vm5, -1e+09, %v667_v1 }
 0x5ca   : > { %v669_v4 = vsel %vm424_vm4, %v668_v3, -inf }
 0x5cb   : > { %670 = vmax.xlane.f32.xlu0 %v669_v4 }
 0x5cf   : > { %1004 = vmax.xlane.f32.xlu0 %v1003_v6 }
 0x64b   : > { %v838_v7 = vpop.xlane.xlu1 %837 }
 0x64c   : > { %v839_v8 = vsub.f32 %v835_v56, %v838_v7 }
 0x64e   : > { %v840_v9 = vmul.f32 1.442695, %v839_v8 }
 0x650   : > { %1472 = vpow2.f32 %v840_v9 }
 0x658   : > { %v671_v11 = vpop.xlane.xlu0 %670 }
 0x659   : > { %v672_v12 = vsub.f32 %v668_v3, %v671_v11 }
 0x65a   : > { %v1473_v14 = vpop.eup %1472 }
 0x65b   : > { %v673_v15 = vmul.f32 1.442695, %v672_v12  ;;  %v842_v16 = vsel %vm424_vm4, %v1473_v14, 0.0 }
 0x65c   : > { %843 = vadd.xlane.f32.xlu0 %v842_v16  ;;  %v1005_v17 = vpop.xlane.xlu0 %1004 }
 0x65d   : > { %1474 = vpow2.f32 %v673_v15  ;;  %v1006_v18 = vsub.f32 %v1002_v5, %v1005_v17 }
 0x65f   : > { %v1007_v19 = vmul.f32 1.442695, %v1006_v18 }
 0x661   : > { %1476 = vpow2.f32 %v1007_v19 }
 0x667   : > { %v1475_v20 = vpop.eup %1474 }
 0x668   : > { %v675_v21 = vsel %vm424_vm4, %v1475_v20, 0.0 }
 0x669   : > { %676 = vadd.xlane.f32.xlu0 %v675_v21 }
 0x66b   : > { %v1477_v22 = vpop.eup %1476 }
 0x66c   : > { %v1009_v23 = vsel %vm424_vm4, %v1477_v22, 0.0 }
 0x66d   : > { %1010 = vadd.xlane.f32.xlu1 %v1009_v23 }
 0x67e   : > { %847 = vrot.lane.b32.xlu1 %v1811_v29, %s1597_s17 }
 0x67f   : > { %680 = vrot.lane.b32.xlu0 %v1811_v29, %s1598_s30 }
 0x682   : > { %1014 = vrot.lane.b32.xlu1 %v1811_v29, %s1599_s20 }
 0x6e9   : > { %v844_v24 = vpop.xlane.xlu0 %843 }
 0x6f6   : > { %v677_v25 = vpop.xlane.xlu0 %676 }
 0x6f7   : > { %1478 = vrcp.f32 %v677_v25 }
 0x6f8   : > { %1480 = vrcp.f32 %v844_v24 }
 0x6fa   : > { %v1011_v26 = vpop.xlane.xlu1 %1010  ;;  %v681_v27 = vpop.permute.xlu0 %680 }
 0x6fb   : > { %1356 = vmatpush3.msra.mxu1 %v681_v27  ;;  %1482 = vrcp.f32 %v1011_v26 }
 0x6fc   : > { %1365 = vmatprep.subr.mxu1 %v1588_v13 }
 0x6fe   : > { %v848_v31 = vpop.permute.xlu1 %847 }
 0x701   : > { %v1479_v28 = vpop.eup %1478 }
 0x702   : > { %v679_v30 = vmul.f32 %v1479_v28, %v1475_v20  ;;  %v1481_v32 = vpop.eup %1480  ;;  %v1015_v34 = vpop.permute.xlu1 %1014 }
 0x703   : > { %v846_v29 = vmul.f32 %v1481_v32, %v1473_v14 }
 0x704   : > { %1358 = vmatmul.mubr.msk.f32.vlgmr.msra.gmra.mrb[6].mxu1 %vm424_vm4, %v679_v30 }
 0x705   : > { %1366 = vmatpush3.msra.mxu1 %v848_v31  ;;  %1367 = vmatprep.mubr.msk.f32.mxu1 %vm1587_vm1, %v1588_v13  ;;  %v1483_v33 = vpop.eup %1482 }
 0x706   : > { %1375 = vmatprep.subr.mxu1 %v1588_v13  ;;  %v1013_v35 = vmul.f32 %v1483_v33, %v1477_v22 }
 0x708   : > { %1368 = vmatmul.mubr.msk.f32.vlgmr.msra.gmra.mrb[8].mxu1 %vm424_vm4, %v846_v29 }
 0x709   : > { %1376 = vmatpush3.msra.mxu1 %v1015_v34  ;;  %1377 = vmatprep.mubr.msk.f32.mxu1 %vm1587_vm1, %v1588_v13  ;;  %v1110_v13 = vld [vmem:[%s1921_s5 + $0x18] sm:$0xff] }
 0x70a   : > { %v1401_v40 = vpack.c.bf16 %v1110_v13, %v1109_v39 }
 0x70c   : > { %1378 = vmatmul.mubr.msk.f32.vlgmr.msra.gmra.mrb[10].mxu1 %vm424_vm4, %v1013_v35  ;;  %1402 = vmatpush3.bf16.msra.mxu0 %v1401_v40 }
 0x7d7   : > { %v752_v41 = vpop.f32.mrb[6].mxu1 }
 0x7d8   : > { %1091 = vrot.lane.b32.xlu1 %v752_v41, %s1600_s13  ;;  %v1359_v42 = vpop.f32.mrb[7].mxu1 }
 0x7db   : > { %v919_v43 = vpop.f32.mrb[8].mxu1 }
 0x7dc   : > { %1095 = vrot.lane.b32.xlu0 %v919_v43, %s1601_s18  ;;  %v1369_v10 = vpop.f32.mrb[9].mxu1 }
 0x7df   : > { %v1086_v44 = vpop.f32.mrb[10].mxu1 }
 0x7e0   : > { %1099 = vrot.lane.b32.xlu1 %v1086_v44, %s1602_s19  ;;  %v1379_v45 = vpop.f32.mrb[11].mxu1 }
 0x84a   : > { %v1092_v46 = vpop.permute.xlu1 %1091 }
 0x84b   : > { %v1102_v48 = vsel %vm424_vm4, %v1857_v59, %v1092_v46 }
 0x84e   : > { %v1096_v47 = vpop.permute.xlu0 %1095 }
 0x84f   : > { %v1104_v49 = vsel %vm1103_vm6, %v1102_v48, %v1096_v47 }
 0x852   : > { %v1100_v50 = vpop.permute.xlu1 %1099 }
 0x853   : > { %v1106_v51 = vsel %vm1105_vm7, %v1104_v49, %v1100_v50 }
 0x854   : > { %1389 = vmatmul.mubr.msk.f32.vlgmr.msra.gmra.mrb[6].mxu0 %vm307_vm0, %v1106_v51 }
 0x927   : > { %v1180_v52 = vpop.f32.mrb[6].mxu0 }
 0x928   : > { %v1184_v53 = vadd.f32 %v1180_v52, %v1776_v0  ;;  %v1390_v54 = vpop.f32.mrb[7].mxu0 }
 0x92a   : > { %1185 = vst.msk [vmem:[%s303_s16] sm:$0xff] %vm307_vm0, %v1184_v53 }
 0x92b PF: > { %p19_p8 = scmp.ge.s32.totalorder %s1660_s26, 4   ;;  %s1931_s21 = smov %s1574_s22 }
 0x92c   : > { %s1932_s22 = smov %s1578_s23  ;;  %s1933_s23 = smov %s1670_s29 }
 0x92d   : > { %s1934_s24 = smov %s1660_s26  ;;  %21 = sbr.rel (!%p19_p8) target bundleno = 5 (0x5), region = 97 }
 0x934   :  { %1205 = vsyncpa [#allocation3], 1 }
 0x935   :  { %1207 = vsyncpa [#allocation3 + $0x1], 1 }
 0x936   :  { %1208 = vsyncpa [#allocation5], 1 }
 0x937   :  { %1210 = vsyncpa [#allocation5 + $0x1], 1 }

</bundles_post_ra>
